<compile_context>
chip_gen: v5e
topology: v5e:2x2
jax: 0.10.0
libtpu: 0.0.40
codegen_flags: <defaults>
</compile_context>

<pallas_src>
import functools

import jax
import jax.numpy as jnp
from jax.experimental import pallas as pl
from jax.experimental.pallas import tpu as pltpu


_NEG_BIG = -1e30  # finite "-inf": keeps the online max / rescale NaN-free


def _round_up(x, m):
    return ((x + m - 1) // m) * m


def _block_size(n_pad, target):
    """Largest multiple-of-128 divisor of n_pad that is <= target."""
    b = min(target, n_pad)
    while n_pad % b:
        b -= 128
    return b


def _supcon_kernel(gid_row_ref, gid_col_ref, q_ref, k_ref, out_ref,
                   m_ref, l_ref, psum_ref, pcnt_ref, *,
                   n_valid, blk_m, blk_n, inv_temp, loss_scale, matmul_dtype):
    # gid_row_ref: [blk_m, 1]   int32   group id of anchor rows
    # gid_col_ref: [1, blk_n]   int32   group id of contrast cols
    # q_ref:       [blk_m, D]   f32     anchor features (row tile)
    # k_ref:       [blk_n, D]   f32     contrast features (col tile)
    # out_ref:     [blk_m, 1]   f32     per-anchor loss (written on last col blk)
    # scratch:     m (running max), l (running denom), psum, pcnt  -- [blk_m, 1]
    i = pl.program_id(0)          # anchor-row block  ("parallel")
    j = pl.program_id(1)          # contrast-col block ("arbitrary", reduction)

    @pl.when(j == 0)
    def _init():
        m_ref[...] = jnp.full(m_ref.shape, _NEG_BIG, jnp.float32)
        l_ref[...] = jnp.zeros(l_ref.shape, jnp.float32)
        psum_ref[...] = jnp.zeros(psum_ref.shape, jnp.float32)
        pcnt_ref[...] = jnp.zeros(pcnt_ref.shape, jnp.float32)

    # Fold 1/temperature into the row tile once (blk_m*D muls, not blk_m*blk_n).
    q = (q_ref[...] * inv_temp).astype(matmul_dtype)          # [blk_m, D]
    k = k_ref[...].astype(matmul_dtype)                       # [blk_n, D]
    # anchor . contrast^T without materializing a transpose: contract on D.
    adc = jax.lax.dot_general(
        q, k, dimension_numbers=(((1,), (1,)), ((), ())),
        preferred_element_type=jnp.float32)                   # [blk_m, blk_n]

    # Masks built in-kernel from iota + group ids (no [N, N] HBM traffic).
    row_ids = i * blk_m + jax.lax.broadcasted_iota(jnp.int32, (blk_m, blk_n), 0)
    col_ids = j * blk_n + jax.lax.broadcasted_iota(jnp.int32, (blk_m, blk_n), 1)
    valid = jnp.logical_and(row_ids != col_ids, col_ids < n_valid)  # denom mask
    pos = jnp.logical_and(valid, gid_row_ref[...] == gid_col_ref[...])

    # Online log-sum-exp over valid (non-self, non-padded) columns; the self
    # masking is fused into the exponent path via the -1e30 fill.
    adc_m = jnp.where(valid, adc, _NEG_BIG)
    m_new = jnp.maximum(m_ref[...], jnp.max(adc_m, axis=1, keepdims=True))
    alpha = jnp.exp(m_ref[...] - m_new)
    l_ref[...] = alpha * l_ref[...] + jnp.sum(
        jnp.exp(adc_m - m_new), axis=1, keepdims=True)
    m_ref[...] = m_new

    # Positive statistics: the row-max shift cancels exactly in the final
    # log-prob, so accumulate raw logits (bounded by |f_i||f_j|/temperature).
    psum_ref[...] += jnp.sum(jnp.where(pos, adc, 0.0), axis=1, keepdims=True)
    pcnt_ref[...] += jnp.sum(pos.astype(jnp.float32), axis=1, keepdims=True)

    @pl.when(j == pl.num_programs(1) - 1)
    def _finalize():
        lse = m_ref[...] + jnp.log(l_ref[...])
        cnt = pcnt_ref[...]
        # Clamp avoids NaN for anchors with zero positives (upstream
        # SupContrast fix); padded rows are zeroed out below anyway.
        inv_cnt = pl.reciprocal(jnp.maximum(cnt, 1.0), approx=False)
        mean_log_prob_pos = (psum_ref[...] - cnt * lse) * inv_cnt
        row_idx = i * blk_m + jax.lax.broadcasted_iota(jnp.int32, (blk_m, 1), 0)
        row_ok = (row_idx < n_valid).astype(jnp.float32)
        out_ref[...] = (-loss_scale) * mean_log_prob_pos * row_ok


def supcon_loss(features, labels=None, mask=None, *, temperature=0.07,
                contrast_mode='all', base_temperature=0.07,
                matmul_dtype=jnp.float32):
    """Pallas implementation of SupConLoss.forward (contrast_mode='all')."""
    if features.ndim < 3:
        raise ValueError('`features` needs to be [bsz, n_views, ...]')
    if features.ndim > 3:
        features = features.reshape(features.shape[0], features.shape[1], -1)
    if contrast_mode != 'all':
        # TODO(synk): contrast_mode='one' (anchor = view 0 only) not implemented.
        raise NotImplementedError("only contrast_mode='all' is implemented")
    if labels is not None and mask is not None:
        raise ValueError('Cannot define both `labels` and `mask`')
    if mask is not None:
        # TODO(synk): arbitrary/asymmetric [bsz, bsz] masks are not expressible
        # as per-row group ids; they would need a dense-mask DMA path.
        raise NotImplementedError('explicit `mask` argument not supported')

    features = features.astype(jnp.float32)
    bsz, n_views, dim = features.shape
    n_total = n_views * bsz

    # contrast_feature = cat(unbind(features, 1), 0)  -> view-major [N, D]
    cf = jnp.transpose(features, (1, 0, 2)).reshape(n_total, dim)

    # Per-row group id: two rows are positives iff ids match (minus self).
    if labels is None:                       # SimCLR degenerate case: eye(bsz)
        sample_gid = jnp.arange(bsz, dtype=jnp.int32)
    else:
        labels = jnp.asarray(labels).reshape(-1)
        if labels.shape[0] != bsz:
            raise ValueError('Num of labels does not match num of features')
        sample_gid = labels.astype(jnp.int32)
    gid = jnp.tile(sample_gid, n_views)      # row v*bsz + b  ->  sample b

    # Lane/sublane-aligned padding; padded rows/cols are masked out in-kernel.
    d_pad = _round_up(max(dim, 128), 128)
    n_pad = _round_up(max(n_total, 128), 128)
    blk_m = _block_size(n_pad, 256)          # anchor-row tile   ("parallel")
    blk_n = _block_size(n_pad, 512)          # contrast-col tile ("arbitrary")

    cf_pad = jnp.zeros((n_pad, d_pad), jnp.float32).at[:n_total, :dim].set(cf)
    gid_pad = jnp.full((n_pad,), -1, jnp.int32).at[:n_total].set(gid)
    gid_row = gid_pad.reshape(n_pad, 1)
    gid_col = gid_pad.reshape(1, n_pad)

    kernel = functools.partial(
        _supcon_kernel,
        n_valid=n_total, blk_m=blk_m, blk_n=blk_n,
        inv_temp=float(1.0 / temperature),
        loss_scale=float(temperature / base_temperature),
        matmul_dtype=matmul_dtype)

    per_row_loss = pl.pallas_call(
        kernel,
        out_shape=jax.ShapeDtypeStruct((n_pad, 1), jnp.float32),
        grid_spec=pltpu.PrefetchScalarGridSpec(
            num_scalar_prefetch=0,
            grid=(n_pad // blk_m, n_pad // blk_n),
            in_specs=[
                pl.BlockSpec((blk_m, 1), lambda i, j: (i, 0)),       # gid_row
                pl.BlockSpec((1, blk_n), lambda i, j: (0, j)),       # gid_col
                pl.BlockSpec((blk_m, d_pad), lambda i, j: (i, 0)),   # anchors
                pl.BlockSpec((blk_n, d_pad), lambda i, j: (j, 0)),   # contrasts
            ],
            out_specs=pl.BlockSpec((blk_m, 1), lambda i, j: (i, 0)),
            scratch_shapes=[pltpu.VMEM((blk_m, 1), jnp.float32)] * 4,  # m,l,psum,pcnt
        ),
        compiler_params=pltpu.CompilerParams(
            dimension_semantics=("parallel", "arbitrary"),
            vmem_limit_bytes=32 * 1024 * 1024),
    )(gid_row, gid_col, cf_pad, cf_pad)

    # loss.view(anchor_count, batch_size).mean() == mean over all N anchor rows.
    return jnp.sum(per_row_loss) / jnp.float32(n_total)


def _supcon_loss_ref(features, labels=None,
                     temperature=0.07, base_temperature=0.07):
    """Pure-JAX reference (mirrors the PyTorch code) for sanity checking."""
    features = features.astype(jnp.float32)
    bsz, n_views, dim = features.shape
    cf = jnp.transpose(features, (1, 0, 2)).reshape(n_views * bsz, dim)
    n = n_views * bsz
    if labels is None:
        base_mask = jnp.eye(bsz, dtype=jnp.float32)
    else:
        labels = labels.reshape(-1, 1)
        base_mask = (labels == labels.T).astype(jnp.float32)
    m = jnp.tile(base_mask, (n_views, n_views))
    logits_mask = 1.0 - jnp.eye(n, dtype=jnp.float32)
    m = m * logits_mask
    adc = (cf @ cf.T) / temperature
    logits = adc - jnp.max(adc, axis=1, keepdims=True)
    exp_logits = jnp.exp(logits) * logits_mask
    log_prob = logits - jnp.log(jnp.sum(exp_logits, axis=1, keepdims=True))
    mean_log_prob_pos = jnp.sum(m * log_prob, axis=1) / jnp.sum(m, axis=1)
    loss = -(temperature / base_temperature) * mean_log_prob_pos
    return jnp.mean(loss)


if __name__ == "__main__":
    key = jax.random.PRNGKey(0)
    k1, k2, k3, k4 = jax.random.split(key, 4)

    # Small case: bsz=8, n_views=2, dim=32 (N=16, single tile after padding).
    bsz, n_views, dim = 8, 2, 32
    feats = jax.random.normal(k1, (bsz, n_views, dim), dtype=jnp.float32)
    feats = feats / jnp.linalg.norm(feats, axis=-1, keepdims=True)
    labels = jax.random.randint(k2, (bsz,), 0, 3)

    loss_unsup = supcon_loss(feats)                      # SimCLR (labels=None)
    loss_sup = supcon_loss(feats, labels=labels)         # supervised
    jax.block_until_ready((loss_unsup, loss_sup))

    ref_unsup = _supcon_loss_ref(feats)
    ref_sup = _supcon_loss_ref(feats, labels=labels)
    assert jnp.allclose(loss_unsup, ref_unsup, rtol=1e-5, atol=1e-5), (
        loss_unsup, ref_unsup)
    assert jnp.allclose(loss_sup, ref_sup, rtol=1e-5, atol=1e-5), (
        loss_sup, ref_sup)

    # Larger, unaligned case exercising the multi-block online-LSE path
    # (N=576 -> padded to 640, grid 5x5; dim=40 -> padded to 128 lanes).
    bsz2, n_views2, dim2 = 288, 2, 40
    feats2 = jax.random.normal(k3, (bsz2, n_views2, dim2), dtype=jnp.float32)
    feats2 = feats2 / jnp.linalg.norm(feats2, axis=-1, keepdims=True)
    labels2 = jax.random.randint(k4, (bsz2,), 0, 10)
    loss2 = supcon_loss(feats2, labels=labels2)
    jax.block_until_ready(loss2)
    ref2 = _supcon_loss_ref(feats2, labels=labels2)
    assert jnp.allclose(loss2, ref2, rtol=1e-4, atol=1e-4), (loss2, ref2)

    # bf16 MXU inputs (f32 accumulation): same kernel, looser tolerance.
    loss_bf16 = supcon_loss(feats, labels=labels, matmul_dtype=jnp.bfloat16)
    jax.block_until_ready(loss_bf16)
    assert jnp.allclose(loss_bf16, ref_sup, rtol=1e-1, atol=1e-1), (
        loss_bf16, ref_sup)

    print("KERNEL_OK")
</pallas_src>

<mosaic_0001>
module attributes {stable_mosaic.version = 11 : i64} {
  func.func @_supcon_kernel(%arg0: i32, %arg1: i32, %arg2: memref<128x1xi32, #tpu.memory_space<vmem>>, %arg3: memref<1x128xi32, #tpu.memory_space<vmem>>, %arg4: memref<128x128xf32, #tpu.memory_space<vmem>>, %arg5: memref<128x128xf32, #tpu.memory_space<vmem>>, %arg6: memref<128x1xf32, #tpu.memory_space<vmem>>, %arg7: memref<128x1xf32, #tpu.memory_space<vmem>>, %arg8: memref<128x1xf32, #tpu.memory_space<vmem>>, %arg9: memref<128x1xf32, #tpu.memory_space<vmem>>, %arg10: memref<128x1xf32, #tpu.memory_space<vmem>>) attributes {dimension_semantics = [#tpu.dimension_semantics<parallel>, #tpu.dimension_semantics<arbitrary>], iteration_bounds = array<i64: 1, 1>, scalar_prefetch = 0 : i64, scratch_operands = 4 : i64, tpu.core_type = #tpu.core_type<tc>, window_params = [{transform_indices = @transform_0, window_bounds = array<i64: 128, 1>}, {transform_indices = @transform_1, window_bounds = array<i64: 1, 128>}, {transform_indices = @transform_2, window_bounds = array<i64: 128, 128>}, {transform_indices = @transform_3, window_bounds = array<i64: 128, 128>}, {transform_indices = @transform_4, window_bounds = array<i64: 128, 1>}]} {
    %c0_i32 = arith.constant 0 : i32
    %0 = arith.cmpi eq, %arg1, %c0_i32 : i32
    %1 = arith.extui %0 : i1 to i32
    %c0_i32_0 = arith.constant 0 : i32
    %2 = arith.cmpi ne, %1, %c0_i32_0 : i32
    scf.if %2 {
      %cst_36 = arith.constant -1.000000e+30 : f32
      %62 = vector.broadcast %cst_36 : f32 to vector<128x1xf32>
      %c0_37 = arith.constant 0 : index
      %c0_38 = arith.constant 0 : index
      %63 = vector.load %arg7[%c0_37, %c0_38] : memref<128x1xf32, #tpu.memory_space<vmem>>, vector<128x1xf32>
      tpu.vector_store %arg7[%c0_37, %c0_38], %62 {strides = array<i32>} : memref<128x1xf32, #tpu.memory_space<vmem>>, vector<128x1xf32>,
      %cst_39 = arith.constant 0.000000e+00 : f32
      %64 = vector.broadcast %cst_39 : f32 to vector<128x1xf32>
      %c0_40 = arith.constant 0 : index
      %c0_41 = arith.constant 0 : index
      %65 = vector.load %arg8[%c0_40, %c0_41] : memref<128x1xf32, #tpu.memory_space<vmem>>, vector<128x1xf32>
      tpu.vector_store %arg8[%c0_40, %c0_41], %64 {strides = array<i32>} : memref<128x1xf32, #tpu.memory_space<vmem>>, vector<128x1xf32>,
      %cst_42 = arith.constant 0.000000e+00 : f32
      %66 = vector.broadcast %cst_42 : f32 to vector<128x1xf32>
      %c0_43 = arith.constant 0 : index
      %c0_44 = arith.constant 0 : index
      %67 = vector.load %arg9[%c0_43, %c0_44] : memref<128x1xf32, #tpu.memory_space<vmem>>, vector<128x1xf32>
      tpu.vector_store %arg9[%c0_43, %c0_44], %66 {strides = array<i32>} : memref<128x1xf32, #tpu.memory_space<vmem>>, vector<128x1xf32>,
      %cst_45 = arith.constant 0.000000e+00 : f32
      %68 = vector.broadcast %cst_45 : f32 to vector<128x1xf32>
      %c0_46 = arith.constant 0 : index
      %c0_47 = arith.constant 0 : index
      %69 = vector.load %arg10[%c0_46, %c0_47] : memref<128x1xf32, #tpu.memory_space<vmem>>, vector<128x1xf32>
      tpu.vector_store %arg10[%c0_46, %c0_47], %68 {strides = array<i32>} : memref<128x1xf32, #tpu.memory_space<vmem>>, vector<128x1xf32>,
    } else {
    }
    %c0 = arith.constant 0 : index
    %c0_1 = arith.constant 0 : index
    %3 = vector.load %arg4[%c0, %c0_1] : memref<128x128xf32, #tpu.memory_space<vmem>>, vector<128x128xf32>
    %cst = arith.constant 14.2857141 : f32
    %4 = vector.broadcast %cst : f32 to vector<128x128xf32>
    %5 = arith.mulf %3, %4 : vector<128x128xf32>
    %c0_2 = arith.constant 0 : index
    %c0_3 = arith.constant 0 : index
    %6 = vector.load %arg5[%c0_2, %c0_3] : memref<128x128xf32, #tpu.memory_space<vmem>>, vector<128x128xf32>
    %cst_4 = arith.constant dense<0.000000e+00> : vector<128x128xf32>
    %7 = tpu.matmul %5, %6, %cst_4 {dimension_numbers = #tpu.dot_dimension_numbers<[1], [1], [0], [0], [0, 0, 1, 0], [], []>} : vector<128x128xf32>, vector<128x128xf32>, vector<128x128xf32> -> vector<128x128xf32>
    %c128_i32 = arith.constant 128 : i32
    %8 = arith.muli %arg0, %c128_i32 : i32
    %9 = tpu.iota {dimensions = array<i32: 0>} : vector<128x128xi32>
    %10 = vector.broadcast %8 : i32 to vector<128x128xi32>
    %11 = arith.addi %10, %9 : vector<128x128xi32>
    %c128_i32_5 = arith.constant 128 : i32
    %12 = arith.muli %arg1, %c128_i32_5 : i32
    %13 = tpu.iota {dimensions = array<i32: 1>} : vector<128x128xi32>
    %14 = vector.broadcast %12 : i32 to vector<128x128xi32>
    %15 = arith.addi %14, %13 : vector<128x128xi32>
    %16 = arith.cmpi ne, %11, %15 : vector<128x128xi32>
    %c16_i32 = arith.constant 16 : i32
    %17 = vector.broadcast %c16_i32 : i32 to vector<128x128xi32>
    %18 = arith.cmpi slt, %15, %17 : vector<128x128xi32>
    %19 = arith.andi %16, %18 : vector<128x128xi1>
    %c0_6 = arith.constant 0 : index
    %c0_7 = arith.constant 0 : index
    %20 = vector.load %arg2[%c0_6, %c0_7] : memref<128x1xi32, #tpu.memory_space<vmem>>, vector<128x1xi32>
    %c0_8 = arith.constant 0 : index
    %c0_9 = arith.constant 0 : index
    %21 = vector.load %arg3[%c0_8, %c0_9] : memref<1x128xi32, #tpu.memory_space<vmem>>, vector<1x128xi32>
    %22 = vector.broadcast %20 : vector<128x1xi32> to vector<128x128xi32>
    %23 = vector.broadcast %21 : vector<1x128xi32> to vector<128x128xi32>
    %24 = arith.cmpi eq, %22, %23 : vector<128x128xi32>
    %25 = arith.andi %19, %24 : vector<128x128xi1>
    %cst_10 = arith.constant -1.000000e+30 : f32
    %26 = vector.broadcast %cst_10 : f32 to vector<128x128xf32>
    %27 = arith.select %19, %7, %26 : vector<128x128xi1>, vector<128x128xf32>
    %c0_11 = arith.constant 0 : index
    %c0_12 = arith.constant 0 : index
    %28 = vector.load %arg7[%c0_11, %c0_12] : memref<128x1xf32, #tpu.memory_space<vmem>>, vector<128x1xf32>
    %cst_13 = arith.constant dense<0xFF800000> : vector<128xf32>
    %29 = vector.multi_reduction <maximumf>, %27, %cst_13 [1] : vector<128x128xf32> to vector<128xf32>
    %30 = vector.shape_cast %29 : vector<128xf32> to vector<128x1xf32>
    %31 = arith.maximumf %28, %30 : vector<128x1xf32>
    %c0_14 = arith.constant 0 : index
    %c0_15 = arith.constant 0 : index
    %32 = vector.load %arg7[%c0_14, %c0_15] : memref<128x1xf32, #tpu.memory_space<vmem>>, vector<128x1xf32>
    %33 = arith.subf %32, %31 : vector<128x1xf32>
    %34 = math.exp %33 : vector<128x1xf32>
    %c0_16 = arith.constant 0 : index
    %c0_17 = arith.constant 0 : index
    %35 = vector.load %arg8[%c0_16, %c0_17] : memref<128x1xf32, #tpu.memory_space<vmem>>, vector<128x1xf32>
    %36 = arith.mulf %34, %35 : vector<128x1xf32>
    %37 = vector.broadcast %31 : vector<128x1xf32> to vector<128x128xf32>
    %38 = arith.subf %27, %37 : vector<128x128xf32>
    %39 = math.exp %38 : vector<128x128xf32>
    %cst_18 = arith.constant dense<0.000000e+00> : vector<128xf32>
    %40 = vector.multi_reduction <add>, %39, %cst_18 [1] : vector<128x128xf32> to vector<128xf32>
    %41 = vector.shape_cast %40 : vector<128xf32> to vector<128x1xf32>
    %42 = arith.addf %36, %41 : vector<128x1xf32>
    %c0_19 = arith.constant 0 : index
    %c0_20 = arith.constant 0 : index
    %43 = vector.load %arg8[%c0_19, %c0_20] : memref<128x1xf32, #tpu.memory_space<vmem>>, vector<128x1xf32>
    tpu.vector_store %arg8[%c0_19, %c0_20], %42 {strides = array<i32>} : memref<128x1xf32, #tpu.memory_space<vmem>>, vector<128x1xf32>,
    %c0_21 = arith.constant 0 : index
    %c0_22 = arith.constant 0 : index
    %44 = vector.load %arg7[%c0_21, %c0_22] : memref<128x1xf32, #tpu.memory_space<vmem>>, vector<128x1xf32>
    tpu.vector_store %arg7[%c0_21, %c0_22], %31 {strides = array<i32>} : memref<128x1xf32, #tpu.memory_space<vmem>>, vector<128x1xf32>,
    %c0_23 = arith.constant 0 : index
    %c0_24 = arith.constant 0 : index
    %45 = vector.load %arg9[%c0_23, %c0_24] : memref<128x1xf32, #tpu.memory_space<vmem>>, vector<128x1xf32>
    %cst_25 = arith.constant 0.000000e+00 : f32
    %46 = vector.broadcast %cst_25 : f32 to vector<128x128xf32>
    %47 = arith.select %25, %7, %46 : vector<128x128xi1>, vector<128x128xf32>
    %cst_26 = arith.constant dense<0.000000e+00> : vector<128xf32>
    %48 = vector.multi_reduction <add>, %47, %cst_26 [1] : vector<128x128xf32> to vector<128xf32>
    %49 = vector.shape_cast %48 : vector<128xf32> to vector<128x1xf32>
    %50 = arith.addf %45, %49 : vector<128x1xf32>
    %c0_27 = arith.constant 0 : index
    %c0_28 = arith.constant 0 : index
    %51 = vector.load %arg9[%c0_27, %c0_28] : memref<128x1xf32, #tpu.memory_space<vmem>>, vector<128x1xf32>
    tpu.vector_store %arg9[%c0_27, %c0_28], %50 {strides = array<i32>} : memref<128x1xf32, #tpu.memory_space<vmem>>, vector<128x1xf32>,
    %c0_29 = arith.constant 0 : index
    %c0_30 = arith.constant 0 : index
    %52 = vector.load %arg10[%c0_29, %c0_30] : memref<128x1xf32, #tpu.memory_space<vmem>>, vector<128x1xf32>
    %53 = arith.extui %25 : vector<128x128xi1> to vector<128x128xi32>
    %54 = arith.sitofp %53 : vector<128x128xi32> to vector<128x128xf32>
    %cst_31 = arith.constant dense<0.000000e+00> : vector<128xf32>
    %55 = vector.multi_reduction <add>, %54, %cst_31 [1] : vector<128x128xf32> to vector<128xf32>
    %56 = vector.shape_cast %55 : vector<128xf32> to vector<128x1xf32>
    %57 = arith.addf %52, %56 : vector<128x1xf32>
    %c0_32 = arith.constant 0 : index
    %c0_33 = arith.constant 0 : index
    %58 = vector.load %arg10[%c0_32, %c0_33] : memref<128x1xf32, #tpu.memory_space<vmem>>, vector<128x1xf32>
    tpu.vector_store %arg10[%c0_32, %c0_33], %57 {strides = array<i32>} : memref<128x1xf32, #tpu.memory_space<vmem>>, vector<128x1xf32>,
    %c0_i32_34 = arith.constant 0 : i32
    %59 = arith.cmpi eq, %arg1, %c0_i32_34 : i32
    %60 = arith.extui %59 : i1 to i32
    %c0_i32_35 = arith.constant 0 : i32
    %61 = arith.cmpi ne, %60, %c0_i32_35 : i32
    scf.if %61 {
      %c0_36 = arith.constant 0 : index
      %c0_37 = arith.constant 0 : index
      %62 = vector.load %arg7[%c0_36, %c0_37] : memref<128x1xf32, #tpu.memory_space<vmem>>, vector<128x1xf32>
      %c0_38 = arith.constant 0 : index
      %c0_39 = arith.constant 0 : index
      %63 = vector.load %arg8[%c0_38, %c0_39] : memref<128x1xf32, #tpu.memory_space<vmem>>, vector<128x1xf32>
      %64 = math.log %63 : vector<128x1xf32>
      %65 = arith.addf %62, %64 : vector<128x1xf32>
      %c0_40 = arith.constant 0 : index
      %c0_41 = arith.constant 0 : index
      %66 = vector.load %arg10[%c0_40, %c0_41] : memref<128x1xf32, #tpu.memory_space<vmem>>, vector<128x1xf32>
      %cst_42 = arith.constant 1.000000e+00 : f32
      %67 = vector.broadcast %cst_42 : f32 to vector<128x1xf32>
      %68 = arith.maximumf %66, %67 : vector<128x1xf32>
      %69 = tpu.reciprocal %68 : vector<128x1xf32> -> vector<128x1xf32>
      %c0_43 = arith.constant 0 : index
      %c0_44 = arith.constant 0 : index
      %70 = vector.load %arg9[%c0_43, %c0_44] : memref<128x1xf32, #tpu.memory_space<vmem>>, vector<128x1xf32>
      %71 = arith.mulf %66, %65 : vector<128x1xf32>
      %72 = arith.subf %70, %71 : vector<128x1xf32>
      %73 = arith.mulf %72, %69 : vector<128x1xf32>
      %c128_i32_45 = arith.constant 128 : i32
      %74 = arith.muli %arg0, %c128_i32_45 : i32
      %75 = tpu.iota {dimensions = array<i32: 0>} : vector<128x1xi32>
      %76 = vector.broadcast %74 : i32 to vector<128x1xi32>
      %77 = arith.addi %76, %75 : vector<128x1xi32>
      %c16_i32_46 = arith.constant 16 : i32
      %78 = vector.broadcast %c16_i32_46 : i32 to vector<128x1xi32>
      %79 = arith.cmpi slt, %77, %78 : vector<128x1xi32>
      %80 = arith.extui %79 : vector<128x1xi1> to vector<128x1xi32>
      %81 = arith.sitofp %80 : vector<128x1xi32> to vector<128x1xf32>
      %cst_47 = arith.constant -1.000000e+00 : f32
      %82 = vector.broadcast %cst_47 : f32 to vector<128x1xf32>
      %83 = arith.mulf %82, %73 : vector<128x1xf32>
      %84 = arith.mulf %83, %81 : vector<128x1xf32>
      %c0_48 = arith.constant 0 : index
      %c0_49 = arith.constant 0 : index
      %85 = vector.load %arg6[%c0_48, %c0_49] : memref<128x1xf32, #tpu.memory_space<vmem>>, vector<128x1xf32>
      tpu.vector_store %arg6[%c0_48, %c0_49], %84 {strides = array<i32>} : memref<128x1xf32, #tpu.memory_space<vmem>>, vector<128x1xf32>,
    } else {
    }
    return
  }
  func.func @transform_0(%arg0: i32, %arg1: i32) -> (i32, i32) {
    %c0_i32 = arith.constant 0 : i32
    %c0_i32_0 = arith.constant 0 : i32
    return %arg0, %c0_i32 : i32, i32
  }
  func.func @transform_1(%arg0: i32, %arg1: i32) -> (i32, i32) {
    %c0_i32 = arith.constant 0 : i32
    %c0_i32_0 = arith.constant 0 : i32
    return %c0_i32, %arg1 : i32, i32
  }
  func.func @transform_2(%arg0: i32, %arg1: i32) -> (i32, i32) {
    %c0_i32 = arith.constant 0 : i32
    %c0_i32_0 = arith.constant 0 : i32
    return %arg0, %c0_i32 : i32, i32
  }
  func.func @transform_3(%arg0: i32, %arg1: i32) -> (i32, i32) {
    %c0_i32 = arith.constant 0 : i32
    %c0_i32_0 = arith.constant 0 : i32
    return %arg1, %c0_i32 : i32, i32
  }
  func.func @transform_4(%arg0: i32, %arg1: i32) -> (i32, i32) {
    %c0_i32 = arith.constant 0 : i32
    %c0_i32_0 = arith.constant 0 : i32
    return %arg0, %c0_i32 : i32, i32
  }
}

</mosaic_0001>

<bundles_post_ra>
// kernel: tpu_custom_call.1
= control target key start
LH: loop header
LB: loop body
LE: loop exit
PB: predicated region body
PF: predicated region fallthrough
CT: control target
= control target key end

     0   :  { %9 = vsyncpa [#allocation7], 0  ;;  %s1695_s18 = smov [#allocation6]   ;;  %s1696_s20 = smov 128   ;;  %s3317_s0 = inlined_call_operand.vmem [shape: s32[128,1], index: 0, kind: input, shape index: {}]   ;;  %s3318_s1 = inlined_call_operand.vmem [shape: s32[1,128], index: 1, kind: input, shape index: {}]   ;;  %s3319_s2 = inlined_call_operand.vmem [shape: f32[128,128], index: 2, kind: input, shape index: {}]   ;;  %s3320_s3 = inlined_call_operand.hbm [shape: f32[128,128], index: 3, kind: input, shape index: {}]   ;;  %s3321_s4 = inlined_call_operand.vmem [shape: f32[128,1], index: 4, kind: output, shape index: {}]  }
   0x1   :  { %s20_s17 = sshll.u32 %s3320_s3, 4  ;;  %s22_s19 = sshll.u32 %s1695_s18, 4  ;;  %s21_s17 = int_to_ptr.hbm [resolvable:$true] %s20_s17  ;;  %s23_s19 = int_to_ptr.vmem [resolvable:$true] %s22_s19 }
   0x2   :  { %s1697_s21 = smov 8  }
   0x3   :  { %28 = dma.hbm_to_vmem [thread:$0]  %s21_s17, 2048, %s23_s19, [#allocation7], %s1696_s20, %s1696_s20, %s1697_s21  }
   0x4   :  { %1693 = dma.done.wait [#allocation7], 2048  }
   0x5   :  { %1694 = vsyncadd [#allocation7], 4294965248  ;;  %v1698_v0 = vmov 0   ;;  %v290_v1 = vld [vmem:[%s3317_s0 + $0x10] sm:$0xff]  ;;  %v288_v2 = vld [vmem:[%s3317_s0] sm:$0xff]  ;;  %v216_v63 = vlaneseq }
   0x6   :  { %1538 = vset.pattern.permute.xlu1 %v1698_v0  ;;  %1537 = vset.pattern.permute.xlu0 %v1698_v0  ;;  %v149_v3 = vld [vmem:[#allocation6 + $0x78] sm:$0xff]  ;;  %v148_v4 = vld [vmem:[#allocation6 + $0x70] sm:$0xff]  ;;  %v292_v5 = vld [vmem:[%s3317_s0 + $0x20] sm:$0xff] }
   0x7   :  { %1539 = vset.pattern.permute.xlu2 %v1698_v0  ;;  %312 = vperm.xlu1 %1538, %v290_v1   ;;  %v291_v6 = vld [vmem:[%s3317_s0 + $0x18] sm:$0xff]  ;;  %v289_v7 = vld [vmem:[%s3317_s0 + $0x8] sm:$0xff]  ;;  %v146_v10 = vld [vmem:[#allocation6 + $0x60] sm:$0xff] }
   0x8   :  { %306 = vperm.xlu0 %1537, %v288_v2   ;;  %150 = vmatpush.xpose.msra.mxu0 %v149_v3  ;;  %v147_v8 = vld [vmem:[#allocation6 + $0x68] sm:$0xff]  ;;  %v295_v11 = vld [vmem:[%s3317_s0 + $0x38] sm:$0xff]  ;;  %v294_v12 = vld [vmem:[%s3317_s0 + $0x30] sm:$0xff]  ;;  %v1825_v2 = vshrl.u32 %v216_v63, 7 }
   0x9   :  { %1483 = vmatpush.xpose.msra.mxu1 %v149_v3  ;;  %1484 = vmatpush.xpose.msra.mxu2 %v149_v3  ;;  %v293_v9 = vld [vmem:[%s3317_s0 + $0x28] sm:$0xff]  ;;  %v145_v13 = vld [vmem:[#allocation6 + $0x58] sm:$0xff]  ;;  %v296_v14 = vld [vmem:[%s3317_s0 + $0x40] sm:$0xff] }
   0xa   :  { %1485 = vmatpush.xpose.msra.mxu3 %v149_v3  ;;  %318 = vperm.xlu2 %1539, %v292_v5   ;;  %v144_v15 = vld [vmem:[#allocation6 + $0x50] sm:$0xff]  ;;  %v297_v17 = vld [vmem:[%s3317_s0 + $0x48] sm:$0xff]  ;;  %v299_v19 = vld [vmem:[%s3317_s0 + $0x58] sm:$0xff]  ;;  %v1827_v3 = vand.u32 127, %v216_v63  ;;  %v3402_v63 = vmov 0 }
   0xb   :  { %v298_v16 = vld [vmem:[%s3317_s0 + $0x50] sm:$0xff]  ;;  %v143_v18 = vld [vmem:[#allocation6 + $0x48] sm:$0xff]  ;;  %v142_v20 = vld [vmem:[#allocation6 + $0x40] sm:$0xff] }
   0xc   :  { %151 = vmatpush.xpose.msra.mxu0 %v148_v4  ;;  %v301_v21 = vld [vmem:[%s3317_s0 + $0x68] sm:$0xff]  ;;  %v300_v22 = vld [vmem:[%s3317_s0 + $0x60] sm:$0xff]  ;;  %v141_v23 = vld [vmem:[#allocation6 + $0x38] sm:$0xff]  ;;  %vm3324_vm0 = vcmp.lt.s32.totalorder %v1827_v3, 16 }
   0xd   :  { %1486 = vmatpush.xpose.msra.mxu1 %v148_v4  ;;  %1487 = vmatpush.xpose.msra.mxu2 %v148_v4  ;;  %v302_v24 = vld [vmem:[%s3317_s0 + $0x70] sm:$0xff]  ;;  %v303_v26 = vld [vmem:[%s3317_s0 + $0x78] sm:$0xff]  ;;  %v139_v27 = vld [vmem:[#allocation6 + $0x28] sm:$0xff] }
   0xe   :  { %1488 = vmatpush.xpose.msra.mxu3 %v148_v4  ;;  %v140_v25 = vld [vmem:[#allocation6 + $0x30] sm:$0xff]  ;;  %v138_v28 = vld [vmem:[#allocation6 + $0x20] sm:$0xff]  ;;  %v137_v29 = vld [vmem:[#allocation6 + $0x18] sm:$0xff]  ;;  %v221_v4 = vadd.s32 32, %v1825_v2 }
   0xf   :  { %315 = vperm.xlu1 %1538, %v291_v6   ;;  %v136_v30 = vld [vmem:[#allocation6 + $0x10] sm:$0xff]  ;;  %v135_v31 = vld [vmem:[#allocation6 + $0x8] sm:$0xff]  ;;  %v102_v32 = vld [vmem:[%s3319_s2] sm:$0xff] }
  0x10   :  { %309 = vperm.xlu0 %1537, %v289_v7   ;;  %152 = vmatpush.xpose.msra.mxu0 %v147_v8  ;;  %v106_v33 = vld [vmem:[%s3319_s2 + $0x20] sm:$0xff]  ;;  %v118_v37 = vmul.f32 14.285714, %v102_v32  ;;  %v103_v41 = vld [vmem:[%s3319_s2 + $0x8] sm:$0xff]  ;;  %v104_v49 = vld [vmem:[%s3319_s2 + $0x10] sm:$0xff]  ;;  %vm259_vm1 = vcmp.ne.s32.totalorder %v221_v4, %v1827_v3 }
  0x11   :  { %1489 = vmatpush.xpose.msra.mxu1 %v147_v8  ;;  %1490 = vmatpush.xpose.msra.mxu2 %v147_v8  ;;  %v134_v34 = vld [vmem:[#allocation6] sm:$0xff]  ;;  %v122_v38 = vmul.f32 14.285714, %v106_v33  ;;  %v107_v42 = vld [vmem:[%s3319_s2 + $0x28] sm:$0xff]  ;;  %v119_v45 = vmul.f32 14.285714, %v103_v41  ;;  %vm1839_vm2 = vmand %vm259_vm1, %vm3324_vm0 }
  0x12   :  { %1491 = vmatpush.xpose.msra.mxu3 %v147_v8  ;;  %321 = vperm.xlu2 %1539, %v293_v9   ;;  %v110_v35 = vld [vmem:[%s3319_s2 + $0x40] sm:$0xff]  ;;  %v111_v43 = vld [vmem:[%s3319_s2 + $0x48] sm:$0xff]  ;;  %v123_v46 = vmul.f32 14.285714, %v107_v42  ;;  %v108_v50 = vld [vmem:[%s3319_s2 + $0x30] sm:$0xff]  ;;  %v3359_v8 = vmov 0 }
  0x13   :  { %v114_v36 = vld [vmem:[%s3319_s2 + $0x60] sm:$0xff]  ;;  %v126_v39 = vmul.f32 14.285714, %v110_v35  ;;  %v115_v44 = vld [vmem:[%s3319_s2 + $0x68] sm:$0xff]  ;;  %v127_v47 = vmul.f32 14.285714, %v111_v43 }
  0x14   :  { %153 = vmatpush.xpose.msra.mxu0 %v146_v10  ;;  %v130_v40 = vmul.f32 14.285714, %v114_v36  ;;  %v131_v48 = vmul.f32 14.285714, %v115_v44  ;;  %v112_v51 = vld [vmem:[%s3319_s2 + $0x50] sm:$0xff]  ;;  %v105_v57 = vld [vmem:[%s3319_s2 + $0x18] sm:$0xff] }
  0x15   :  { %1492 = vmatpush.xpose.msra.mxu1 %v146_v10  ;;  %1493 = vmatpush.xpose.msra.mxu2 %v146_v10  ;;  %v116_v52 = vld [vmem:[%s3319_s2 + $0x70] sm:$0xff]  ;;  %v120_v53 = vmul.f32 14.285714, %v104_v49  ;;  %v124_v54 = vmul.f32 14.285714, %v108_v50  ;;  %v109_v58 = vld [vmem:[%s3319_s2 + $0x38] sm:$0xff] }
  0x16   :  { %1494 = vmatpush.xpose.msra.mxu3 %v146_v10  ;;  %v128_v55 = vmul.f32 14.285714, %v112_v51  ;;  %v132_v56 = vmul.f32 14.285714, %v116_v52  ;;  %v113_v59 = vld [vmem:[%s3319_s2 + $0x58] sm:$0xff]  ;;  %v1699_v9 = vmov 0.0  }
  0x17   :  { %327 = vperm.xlu1 %1538, %v295_v11   ;;  %v117_v60 = vld [vmem:[%s3319_s2 + $0x78] sm:$0xff]  ;;  %v121_v61 = vmul.f32 14.285714, %v105_v57  ;;  %v125_v62 = vmul.f32 14.285714, %v109_v58  ;;  %v219_v11 = vadd.s32 16, %v1825_v2 }
  0x18   :  { %324 = vperm.xlu0 %1537, %v294_v12   ;;  %154 = vmatpush.xpose.msra.mxu0 %v145_v13  ;;  %v129_v0 = vmul.f32 14.285714, %v113_v59  ;;  %v133_v1 = vmul.f32 14.285714, %v117_v60  ;;  %v1835_v5 = vld [vmem:[%s3318_s1] ss:$0 sm:$0xff] }
  0x19   :  { %1495 = vmatpush.xpose.msra.mxu1 %v145_v13  ;;  %1496 = vmatpush.xpose.msra.mxu2 %v145_v13  ;;  %vm257_vm5 = vcmp.ne.s32.totalorder %v219_v11, %v1827_v3  ;;  %v3375_v35 = vmov 0  ;;  %v3377_v36 = vmov 0  ;;  %v3381_v42 = vmov 0 }
  0x1a   :  { %1497 = vmatpush.xpose.msra.mxu3 %v145_v13  ;;  %330 = vperm.xlu2 %1539, %v296_v14   ;;  %v222_v13 = vadd.s32 40, %v1825_v2  ;;  %vm1858_vm6 = vmand %vm257_vm5, %vm3324_vm0  ;;  %v3361_v14 = vmov 0  ;;  %v226_v43 = vadd.s32 72, %v1825_v2  ;;  %v3383_v44 = vmov 0 }
  0x1b   :  { %v3362_v14 = vsel %vm1858_vm6, 4294967295, %v3361_v14  ;;  %v3387_v49 = vmov 0  ;;  %v3390_v50 = vmov 0  ;;  %v3396_v57 = vmov 0 }
  0x1c   :  { %155 = vmatpush.xpose.msra.mxu0 %v144_v15  ;;  %vm260_vm7 = vcmp.ne.s32.totalorder %v222_v13, %v1827_v3  ;;  %v229_v58 = vadd.s32 96, %v1825_v2  ;;  %v3398_v59 = vmov 0  ;;  %v232_v11 = vadd.s32 120, %v1825_v2 }
  0x1d   :  { %1498 = vmatpush.xpose.msra.mxu1 %v144_v15  ;;  %1499 = vmatpush.xpose.msra.mxu2 %v144_v15  ;;  %vm1879_vm11 = vmand %vm260_vm7, %vm3324_vm0 }
  0x1e   :  { %1500 = vmatpush.xpose.msra.mxu3 %v144_v15 }
  0x1f   :  { %336 = vperm.xlu1 %1538, %v298_v16  }
  0x20   :  { %333 = vperm.xlu0 %1537, %v297_v17   ;;  %156 = vmatpush.xpose.msra.mxu0 %v143_v18  ;;  %v220_v17 = vadd.s32 24, %v1825_v2 }
  0x21   :  { %1501 = vmatpush.xpose.msra.mxu1 %v143_v18  ;;  %1502 = vmatpush.xpose.msra.mxu2 %v143_v18 }
  0x22   :  { %1503 = vmatpush.xpose.msra.mxu3 %v143_v18  ;;  %339 = vperm.xlu2 %1539, %v299_v19   ;;  %v3363_v18 = vmov 0  ;;  %vm258_vm12 = vcmp.ne.s32.totalorder %v220_v17, %v1827_v3 }
  0x23   :  { %vm1893_vm14 = vmand %vm258_vm12, %vm3324_vm0 }
  0x24   :  { %157 = vmatpush.xpose.msra.mxu0 %v142_v20 }
  0x25   :  { %1504 = vmatpush.xpose.msra.mxu1 %v142_v20  ;;  %1505 = vmatpush.xpose.msra.mxu2 %v142_v20 }
  0x26   :  { %1506 = vmatpush.xpose.msra.mxu3 %v142_v20  ;;  %v3365_v20 = vmov 0 }
  0x27   :  { %345 = vperm.xlu1 %1538, %v301_v21   ;;  %v3366_v20 = vsel %vm1879_vm11, 4294967295, %v3365_v20 }
  0x28   :  { %342 = vperm.xlu0 %1537, %v300_v22   ;;  %158 = vmatpush.xpose.msra.mxu0 %v141_v23  ;;  %v225_v22 = vadd.s32 64, %v1825_v2 }
  0x29   :  { %1507 = vmatpush.xpose.msra.mxu1 %v141_v23  ;;  %1508 = vmatpush.xpose.msra.mxu2 %v141_v23 }
  0x2a   :  { %1509 = vmatpush.xpose.msra.mxu3 %v141_v23  ;;  %348 = vperm.xlu2 %1539, %v302_v24   ;;  %v3369_v24 = vmov 0  ;;  %vm263_vm15 = vcmp.ne.s32.totalorder %v225_v22, %v1827_v3 }
  0x2b   :  { %v3370_v24 = vsel %vm1893_vm14, 4294967295, %v3369_v24  ;;  %vm1919_vm7 = vmand %vm263_vm15, %vm3324_vm0 }
  0x2c   :  { %159 = vmatpush.xpose.msra.mxu0 %v140_v25 }
  0x2d   :  { %1510 = vmatpush.xpose.msra.mxu1 %v140_v25  ;;  %1511 = vmatpush.xpose.msra.mxu2 %v140_v25 }
  0x2e   :  { %1512 = vmatpush.xpose.msra.mxu3 %v140_v25 }
  0x30   :  { %351 = vperm.xlu0 %1537, %v303_v26   ;;  %160 = vmatpush.xpose.msra.mxu0 %v139_v27 }
  0x31   :  { %1513 = vmatpush.xpose.msra.mxu1 %v139_v27  ;;  %1514 = vmatpush.xpose.msra.mxu2 %v139_v27 }
  0x32   :  { %1515 = vmatpush.xpose.msra.mxu3 %v139_v27  ;;  %v224_v27 = vadd.s32 56, %v1825_v2 }
  0x34   :  { %161 = vmatpush.xpose.msra.mxu0 %v138_v28 }
  0x35   :  { %1516 = vmatpush.xpose.msra.mxu1 %v138_v28  ;;  %1517 = vmatpush.xpose.msra.mxu2 %v138_v28 }
  0x36   :  { %1518 = vmatpush.xpose.msra.mxu3 %v138_v28 }
  0x38   :  { %162 = vmatpush.xpose.msra.mxu0 %v137_v29 }
  0x39   :  { %1519 = vmatpush.xpose.msra.mxu1 %v137_v29  ;;  %1520 = vmatpush.xpose.msra.mxu2 %v137_v29 }
  0x3a   :  { %1521 = vmatpush.xpose.msra.mxu3 %v137_v29  ;;  %v223_v29 = vadd.s32 48, %v1825_v2 }
  0x3c   :  { %163 = vmatpush.xpose.msra.mxu0 %v136_v30 }
  0x3d   :  { %1522 = vmatpush.xpose.msra.mxu1 %v136_v30  ;;  %1523 = vmatpush.xpose.msra.mxu2 %v136_v30 }
  0x3e   :  { %1524 = vmatpush.xpose.msra.mxu3 %v136_v30  ;;  %v3371_v30 = vmov 0 }
  0x40   :  { %164 = vmatpush.xpose.msra.mxu0 %v135_v31 }
  0x41   :  { %1525 = vmatpush.xpose.msra.mxu1 %v135_v31  ;;  %1526 = vmatpush.xpose.msra.mxu2 %v135_v31 }
  0x42   :  { %1527 = vmatpush.xpose.msra.mxu3 %v135_v31  ;;  %v228_v31 = vadd.s32 88, %v1825_v2 }
  0x44   :  { %165 = vmatpush.xpose.msra.mxu0 %v134_v34 }
  0x45   :  { %1528 = vmatpush.xpose.msra.mxu1 %v134_v34  ;;  %1529 = vmatpush.xpose.msra.mxu2 %v134_v34 }
  0x46   :  { %1530 = vmatpush.xpose.msra.mxu3 %v134_v34 }
  0x47   :  { %166 = vmatmul.f32.vlgmr.msra.gmra.mxu0 %v118_v37 }
  0x48   :  { %178 = vmatmul.f32.vlgmr.msra.gmra.mxu1 %v122_v38  ;;  %190 = vmatmul.f32.vlgmr.msra.gmra.mxu2 %v126_v39  ;;  %v3379_v39 = vmov 0 }
  0x49   :  { %202 = vmatmul.f32.vlgmr.msra.gmra.mxu3 %v130_v40  ;;  %v227_v40 = vadd.s32 80, %v1825_v2 }
  0x4f   :  { %169 = vmatmul.f32.gmra.mxu0 %v119_v45  ;;  %v231_v45 = vadd.s32 112, %v1825_v2 }
  0x50   :  { %181 = vmatmul.f32.gmra.mxu1 %v123_v46  ;;  %193 = vmatmul.f32.gmra.mxu2 %v127_v47  ;;  %v3385_v47 = vmov 0 }
  0x51   :  { %205 = vmatmul.f32.gmra.mxu3 %v131_v48 }
  0x57   :  { %172 = vmatmul.f32.gmra.mxu0 %v120_v53 }
  0x58   :  { %184 = vmatmul.f32.gmra.mxu1 %v124_v54  ;;  %196 = vmatmul.f32.gmra.mxu2 %v128_v55  ;;  %v3393_v54 = vmov 0  ;;  %v230_v55 = vadd.s32 104, %v1825_v2 }
  0x59   :  { %208 = vmatmul.f32.gmra.mxu3 %v132_v56 }
  0x5f   :  { %175 = vmatmul.f32.gmra.mxu0 %v121_v61  ;;  %v3400_v61 = vmov 0 }
  0x60   :  { %187 = vmatmul.f32.gmra.mxu1 %v125_v62  ;;  %199 = vmatmul.f32.gmra.mxu2 %v129_v0  ;;  %v218_v0 = vadd.s32 8, %v1825_v2 }
  0x61   :  { %211 = vmatmul.f32.gmra.mxu3 %v133_v1  ;;  %v3405_v1 = vmov 0 }
  0x64   :  { %v319_v7 = vpop.permute.xlu2 %318 }
  0x65   :  { %vm358_vm3 = vcmp.eq.s32.totalorder %v319_v7, %v1835_v5 }
  0x66   :  { %vm1846_vm4 = vmand %vm1839_vm2, %vm358_vm3 }
  0x67   :  { %v3360_v8 = vsel %vm1846_vm4, 4294967295, %v3359_v8  ;;  %v1471_v10 = vsel %vm1846_vm4, 1.0, %v1699_v9 }
  0x68   :  { %907 = vadd.xlane.f32.xlu2 %v1471_v10 }
  0x6c   :  { %v322_v12 = vpop.permute.xlu2 %321 }
  0x6d   :  { %vm359_vm10 = vcmp.eq.s32.totalorder %v322_v12, %v1835_v5 }
  0x6e   :  { %vm1887_vm13 = vmand %vm1879_vm11, %vm359_vm10  ;;  %vm261_vm10 = vcmp.ne.s32.totalorder %v223_v29, %v1827_v3 }
  0x6f   :  { %v1472_v28 = vsel %vm1887_vm13, 1.0, %v1699_v9 }
  0x74   :  { %v331_v21 = vpop.permute.xlu2 %330 }
  0x75   :  { %vm362_vm5 = vcmp.eq.s32.totalorder %v331_v21, %v1835_v5 }
  0x76   :  { %vm1927_vm12 = vmand %vm1919_vm7, %vm362_vm5 }
  0x77   :  { %v3376_v35 = vsel %vm1927_vm12, 4294967295, %v3375_v35  ;;  %v1475_v41 = vsel %vm1927_vm12, 1.0, %v1699_v9 }
  0x79   :  { %v313_v15 = vpop.permute.xlu1 %312 }
  0x7a   :  { %v1862_v16 = vpop.permute.xlu0 %306  ;;  %vm356_vm8 = vcmp.eq.s32.totalorder %v313_v15, %v1835_v5  ;;  %v3413_v15 = vmov 0 }
  0x7b   :  { %vm1869_vm9 = vmand %vm1858_vm6, %vm356_vm8  ;;  %vm262_vm8 = vcmp.ne.s32.totalorder %v224_v27, %v1827_v3 }
  0x7c   :  { %v3364_v18 = vsel %vm1869_vm9, 4294967295, %v3363_v18  ;;  %v1469_v19 = vsel %vm1869_vm9, 1.0, %v1699_v9  ;;  %v340_v34 = vpop.permute.xlu2 %339  ;;  %vm1934_vm15 = vmand %vm262_vm8, %vm3324_vm0  ;;  %vm3389_vm9 = vcmp.lt.s32.totalorder %v1827_v3, 16 }
  0x7d   :  { %903 = vadd.xlane.f32.xlu1 %v1469_v19  ;;  %v3378_v36 = vsel %vm1934_vm15, 4294967295, %v3377_v36 }
  0x81   :  { %v316_v25 = vpop.permute.xlu1 %315 }
  0x82   :  { %v1897_v26 = vpop.permute.xlu0 %309  ;;  %vm357_vm1 = vcmp.eq.s32.totalorder %v316_v25, %v1835_v5 }
  0x83   :  { %vm1908_vm3 = vmand %vm1893_vm14, %vm357_vm1  ;;  %vm266_vm1 = vcmp.ne.s32.totalorder %v228_v31, %v1827_v3 }
  0x84   :  { %v3372_v30 = vsel %vm1908_vm3, 4294967295, %v3371_v30  ;;  %v1470_v32 = vsel %vm1908_vm3, 1.0, %v1699_v9  ;;  %vm1940_vm3 = vmand %vm261_vm10, %vm3324_vm0  ;;  %v349_v51 = vpop.permute.xlu2 %348 }
  0x85   :  { %909 = vadd.xlane.f32.xlu1 %v1472_v28  ;;  %905 = vadd.xlane.f32.xlu0 %v1470_v32  ;;  %v3380_v39 = vsel %vm1940_vm3, 4294967295, %v3379_v39  ;;  %vm1952_vm8 = vmand %vm266_vm1, %vm3324_vm0  ;;  %vm365_vm0 = vcmp.eq.s32.totalorder %v340_v34, %v1835_v5 }
  0x86   :  { %v3382_v42 = vsel %vm1952_vm8, 4294967295, %v3381_v42 }
  0x89   :  { %v328_v37 = vpop.permute.xlu1 %327 }
  0x8a   :  { %v325_v38 = vpop.permute.xlu0 %324  ;;  %vm361_vm5 = vcmp.eq.s32.totalorder %v328_v37, %v1835_v5 }
  0x8b   :  { %vm360_vm14 = vcmp.eq.s32.totalorder %v325_v38, %v1835_v5  ;;  %vm1959_vm10 = vmand %vm1934_vm15, %vm361_vm5  ;;  %vm265_vm5 = vcmp.ne.s32.totalorder %v227_v40, %v1827_v3  ;;  %vm264_vm15 = vcmp.ne.s32.totalorder %v226_v43, %v1827_v3 }
  0x8c   :  { %v3384_v44 = vsel %vm1959_vm10, 4294967295, %v3383_v44  ;;  %v1474_v46 = vsel %vm1959_vm10, 1.0, %v1699_v9  ;;  %vm1969_vm1 = vmand %vm1940_vm3, %vm360_vm14  ;;  %vm269_vm14 = vcmp.ne.s32.totalorder %v231_v45, %v1827_v3 }
  0x8d   :  { %v3386_v47 = vsel %vm1969_vm1, 4294967295, %v3385_v47  ;;  %915 = vadd.xlane.f32.xlu1 %v1475_v41  ;;  %913 = vadd.xlane.f32.xlu2 %v1474_v46  ;;  %v1473_v48 = vsel %vm1969_vm1, 1.0, %v1699_v9  ;;  %vm1981_vm10 = vmand %vm1952_vm8, %vm365_vm0 }
  0x8e   :  { %911 = vadd.xlane.f32.xlu0 %v1473_v48  ;;  %v3388_v49 = vsel %vm1981_vm10, 4294967295, %v3387_v49  ;;  %vm1988_vm3 = vmand %vm265_vm5, %vm3389_vm9  ;;  %v1478_v56 = vsel %vm1981_vm10, 1.0, %v1699_v9  ;;  %vm3404_vm10 = vcmp.lt.s32.totalorder %v1827_v3, 16 }
  0x8f   :  { %v3391_v50 = vsel %vm1988_vm3, 4294967295, %v3390_v50  ;;  %vm3392_vm1 = vmmov %vm3389_vm9 }
  0x90   :  { %vm1994_vm11 = vmand %vm264_vm15, %vm3392_vm1 }
  0x91   :  { %v337_v52 = vpop.permute.xlu1 %336  ;;  %v3394_v54 = vsel %vm1994_vm11, 4294967295, %v3393_v54  ;;  %vm3395_vm9 = vmmov %vm3392_vm1 }
  0x92   :  { %v334_v53 = vpop.permute.xlu0 %333  ;;  %vm364_vm0 = vcmp.eq.s32.totalorder %v337_v52, %v1835_v5  ;;  %vm2006_vm5 = vmand %vm269_vm14, %vm3395_vm9  ;;  %vm368_vm14 = vcmp.eq.s32.totalorder %v349_v51, %v1835_v5  ;;  %vm267_vm9 = vcmp.ne.s32.totalorder %v229_v58, %v1827_v3 }
  0x93   :  { %vm363_vm8 = vcmp.eq.s32.totalorder %v334_v53, %v1835_v5  ;;  %v3397_v57 = vsel %vm2006_vm5, 4294967295, %v3396_v57  ;;  %vm2013_vm15 = vmand %vm1988_vm3, %vm364_vm0  ;;  %vm268_vm0 = vcmp.ne.s32.totalorder %v230_v55, %v1827_v3 }
  0x94   :  { %v3399_v59 = vsel %vm2013_vm15, 4294967295, %v3398_v59  ;;  %v1477_v60 = vsel %vm2013_vm15, 1.0, %v1699_v9  ;;  %vm2022_vm1 = vmand %vm1994_vm11, %vm363_vm8  ;;  %vm255_vm8 = vcmp.ne.s32.totalorder %v1825_v2, %v1827_v3  ;;  %vm354_vm11 = vcmp.eq.s32.totalorder %v1862_v16, %v1835_v5 }
  0x95   :  { %v3401_v61 = vsel %vm2022_vm1, 4294967295, %v3400_v61  ;;  %921 = vadd.xlane.f32.xlu1 %v1478_v56  ;;  %919 = vadd.xlane.f32.xlu2 %v1477_v60  ;;  %v1476_v62 = vsel %vm2022_vm1, 1.0, %v1699_v9  ;;  %vm2034_vm15 = vmand %vm2006_vm5, %vm368_vm14 }
  0x96   :  { %917 = vadd.xlane.f32.xlu0 %v1476_v62  ;;  %v3403_v63 = vsel %vm2034_vm15, 4294967295, %v3402_v63  ;;  %vm2043_vm3 = vmand %vm268_vm0, %vm3404_vm10  ;;  %v1481_v12 = vsel %vm2034_vm15, 1.0, %v1699_v9  ;;  %vm3417_vm15 = vcmp.lt.s32.totalorder %v1827_v3, 16 }
  0x97   :  { %v3406_v1 = vsel %vm2043_vm3, 4294967295, %v3405_v1  ;;  %vm3407_vm1 = vmmov %vm3404_vm10 }
  0x98   :  { %vm2049_vm6 = vmand %vm267_vm9, %vm3407_vm1  ;;  %vm256_vm9 = vcmp.ne.s32.totalorder %v218_v0, %v1827_v3 }
  0x99   :  { %v346_v4 = vpop.permute.xlu1 %345  ;;  %vm3410_vm10 = vmmov %vm3407_vm1 }
  0x9a   :  { %v343_v7 = vpop.permute.xlu0 %342  ;;  %vm367_vm14 = vcmp.eq.s32.totalorder %v346_v4, %v1835_v5  ;;  %vm2061_vm0 = vmand %vm255_vm8, %vm3410_vm10  ;;  %vm355_vm10 = vcmp.eq.s32.totalorder %v1897_v26, %v1835_v5 }
  0x9b   :  { %vm366_vm5 = vcmp.eq.s32.totalorder %v343_v7, %v1835_v5  ;;  %vm2067_vm1 = vmand %vm2043_vm3, %vm367_vm14  ;;  %vm270_vm14 = vcmp.ne.s32.totalorder %v232_v11, %v1827_v3 }
  0x9c   :  { %v3414_v15 = vsel %vm2067_vm1, 4294967295, %v3413_v15  ;;  %v1480_v2 = vsel %vm2067_vm1, 1.0, %v1699_v9  ;;  %vm2079_vm8 = vmand %vm2049_vm6, %vm366_vm5 }
  0x9d   :  { %927 = vadd.xlane.f32.xlu1 %v1481_v12  ;;  %925 = vadd.xlane.f32.xlu2 %v1480_v2  ;;  %v1479_v19 = vsel %vm2079_vm8, 1.0, %v1699_v9  ;;  %vm2091_vm3 = vmand %vm256_vm9, %vm3417_vm15 }
  0x9e   :  { %923 = vadd.xlane.f32.xlu0 %v1479_v19  ;;  %vm370_vm5 = vmand %vm2061_vm0, %vm354_vm11  ;;  %vm3428_vm11 = vnez %v3360_v8 }
  0x9f   :  { %vm3420_vm1 = vmmov %vm3417_vm15  ;;  %v1467_v3 = vsel %vm370_vm5, 1.0, %v1699_v9 }
  0xa0   :  { %vm2099_vm4 = vmand %vm270_vm14, %vm3420_vm1  ;;  %vm3434_vm1 = vnez %v3380_v39  ;;  %vm3435_vm14 = vnez %v3401_v61 }
  0xa1   :  { %vm2105_vm12 = vmand %vm2091_vm3, %vm355_vm10  ;;  %vm3436_vm10 = vnez %v3386_v47 }
  0xa2   :  { %v352_v22 = vpop.permute.xlu0 %351  ;;  %v1468_v27 = vsel %vm2105_vm12, 1.0, %v1699_v9 }
  0xa3   :  { %vm369_vm15 = vcmp.eq.s32.totalorder %v352_v22, %v1835_v5 }
  0xa4   :  { %vm2112_vm9 = vmand %vm2099_vm4, %vm369_vm15  ;;  %vm3438_vm15 = vnez %v3397_v57 }
  0xa5   :  { %v1482_v28 = vsel %vm2112_vm9, 1.0, %v1699_v9  ;;  %899 = vadd.xlane.f32.xlu2 %v1467_v3  ;;  %901 = vadd.xlane.f32.xlu1 %v1468_v27 }
  0xa6   :  { %929 = vadd.xlane.f32.xlu0 %v1482_v28 }
  0xc4   :  { %v167_v5 = vpop.f32.mrf.mxu0 }
  0xc5   :  { %v771_v29 = vsel %vm370_vm5, %v167_v5, 0.0  ;;  %v2125_v31 = vsel %vm2061_vm0, %v167_v5, -1e+30  ;;  %v179_v32 = vpop.f32.mrf.mxu1  ;;  %vm3433_vm0 = vnez %v3366_v20  ;;  %vm3437_vm5 = vnez %v3391_v50 }
  0xc6   :  { %787 = vadd.xlane.f32.xlu2 %v771_v29  ;;  %418 = vmax.xlane.f32.xlu1 %v2125_v31  ;;  %v2132_v38 = vsel %vm1839_vm2, %v179_v32, -1e+30  ;;  %vm37_vm2 = vcmask 7168   ;;  %v775_v48 = vsel %vm3428_vm11, %v179_v32, 0.0  ;;  %vm3440_vm11 = vnez %v3378_v36 }
  0xc7   :  { %88 = vst.msk [vmem:[#allocation5 + $0x10] sm:$0xff] %vm37_vm2, %v1699_v9 }
  0xc8   :  { %54 = vst.msk [vmem:[#allocation3] sm:$0xff] %vm37_vm2, %v1699_v9 }
  0xc9   :  { %55 = vst.msk [vmem:[#allocation3 + $0x8] sm:$0xff] %vm37_vm2, %v1699_v9 }
  0xca   :  { %56 = vst.msk [vmem:[#allocation3 + $0x10] sm:$0xff] %vm37_vm2, %v1699_v9 }
  0xcb   :  { %v191_v34 = vpop.f32.mrf.mxu2  ;;  %57 = vst.msk [vmem:[#allocation3 + $0x18] sm:$0xff] %vm37_vm2, %v1699_v9 }
  0xcc   :  { %v2128_v37 = vpop.f32.mrf.mxu3  ;;  %v2141_v41 = vsel %vm1919_vm7, %v191_v34, -1e+30  ;;  %58 = vst.msk [vmem:[#allocation3 + $0x20] sm:$0xff] %vm37_vm2, %v1699_v9  ;;  %v170_v51 = vpop.f32.mrf.mxu0  ;;  %vm3430_vm7 = vnez %v3394_v54 }
  0xcd   :  { %v2137_v40 = vsel %vm2049_vm6, %v2128_v37, -1e+30  ;;  %v182_v6 = vpop.f32.mrf.mxu1  ;;  %vm3427_vm6 = vnez %v3376_v35  ;;  %59 = vst.msk [vmem:[#allocation3 + $0x28] sm:$0xff] %vm37_vm2, %v1699_v9  ;;  %v2192_v53 = vsel %vm2091_vm3, %v170_v51, -1e+30  ;;  %v772_v54 = vsel %vm2105_vm12, %v170_v51, 0.0 }
  0xce   :  { %442 = vmax.xlane.f32.xlu0 %v2137_v40  ;;  %434 = vmax.xlane.f32.xlu2 %v2141_v41  ;;  %v776_v45 = vsel %vm1887_vm13, %v182_v6, 0.0  ;;  %v779_v46 = vsel %vm3427_vm6, %v191_v34, 0.0  ;;  %60 = vst.msk [vmem:[#allocation3 + $0x30] sm:$0xff] %vm37_vm2, %v1699_v9  ;;  %vm3429_vm13 = vnez %v3414_v15  ;;  %vm3431_vm3 = vnez %v3362_v14  ;;  %v853_v39 = vld [vmem:[#allocation5 + $0x10] sm:$0xff] }
  0xcf   :  { %426 = vmax.xlane.f32.xlu1 %v2132_v38  ;;  %61 = vst.msk [vmem:[#allocation3 + $0x38] sm:$0xff] %vm37_vm2, %v1699_v9  ;;  %vm3432_vm12 = vnez %v3406_v1  ;;  %v2235_v62 = vsel %vm3433_vm0, %v182_v6, -1e+30  ;;  %vm3439_vm6 = vnez %v3364_v18  ;;  %vm3455_vm0 = vnez %v3388_v49 }
  0xd0   :  { %62 = vst.msk [vmem:[#allocation3 + $0x40] sm:$0xff] %vm37_vm2, %v1699_v9 }
  0xd1   :  { %63 = vst.msk [vmem:[#allocation3 + $0x48] sm:$0xff] %vm37_vm2, %v1699_v9 }
  0xd2   :  { %64 = vst.msk [vmem:[#allocation3 + $0x50] sm:$0xff] %vm37_vm2, %v1699_v9 }
  0xd3   :  { %v194_v8 = vpop.f32.mrf.mxu2  ;;  %65 = vst.msk [vmem:[#allocation3 + $0x58] sm:$0xff] %vm37_vm2, %v1699_v9 }
  0xd4   :  { %v2157_v33 = vpop.f32.mrf.mxu3  ;;  %v2184_v35 = vsel %vm3430_vm7, %v194_v8, -1e+30  ;;  %66 = vst.msk [vmem:[#allocation3 + $0x60] sm:$0xff] %vm37_vm2, %v1699_v9  ;;  %v173_v55 = vpop.f32.mrf.mxu0  ;;  %v780_v1 = vsel %vm3435_vm14, %v194_v8, 0.0  ;;  %vm3441_vm7 = vnez %v3370_v24  ;;  %vm3459_vm14 = vnez %v3399_v59 }
  0xd5   :  { %67 = vst.msk [vmem:[#allocation3 + $0x68] sm:$0xff] %vm37_vm2, %v1699_v9  ;;  %v2214_v56 = vsel %vm3431_vm3, %v173_v55, -1e+30  ;;  %v2223_v60 = vsel %vm3432_vm12, %v2157_v33, -1e+30  ;;  %v185_v0 = vpop.f32.mrf.mxu1  ;;  %v773_v12 = vsel %vm3439_vm6, %v173_v55, 0.0  ;;  %vm3442_vm3 = vnez %v3384_v44 }
  0xd6   :  { %797 = vadd.xlane.f32.xlu0 %v776_v45  ;;  %803 = vadd.xlane.f32.xlu2 %v779_v46  ;;  %68 = vst.msk [vmem:[#allocation3 + $0x70] sm:$0xff] %vm37_vm2, %v1699_v9  ;;  %v2251_v20 = vsel %vm3434_vm1, %v185_v0, -1e+30  ;;  %v777_v4 = vsel %vm3436_vm10, %v185_v0, 0.0  ;;  %vm3443_vm12 = vnez %v3372_v30  ;;  %vm3457_vm1 = vnez %v3403_v63 }
  0xd7   :  { %795 = vadd.xlane.f32.xlu1 %v775_v48  ;;  %69 = vst.msk [vmem:[#allocation3 + $0x78] sm:$0xff] %vm37_vm2, %v1699_v9  ;;  %v3460_v17 = vsel %vm3429_vm13, %v2157_v33, 0.0  ;;  %v522_v15 = vld [vmem:[#allocation3 + $0x40] sm:$0xff] }
  0xd8   :  { %70 = vst.msk [vmem:[#allocation4] sm:$0xff] %vm37_vm2, %v1699_v9 }
  0xd9   :  { %71 = vst.msk [vmem:[#allocation4 + $0x8] sm:$0xff] %vm37_vm2, %v1699_v9 }
  0xda   :  { %72 = vst.msk [vmem:[#allocation4 + $0x10] sm:$0xff] %vm37_vm2, %v1699_v9 }
  0xdb   :  { %73 = vst.msk [vmem:[#allocation4 + $0x18] sm:$0xff] %vm37_vm2, %v1699_v9  ;;  %v2274_v47 = vpop.f32.mrf.mxu2  ;;  %v908_v50 = vpop.xlane.xlu2 %907 }
  0xdc   :  { %v2188_v52 = vpop.f32.mrf.mxu3  ;;  %74 = vst.msk [vmem:[#allocation4 + $0x20] sm:$0xff] %vm37_vm2, %v1699_v9  ;;  %v2282_v10 = vsel %vm3437_vm5, %v2274_v47, -1e+30  ;;  %v176_v2 = vpop.f32.mrf.mxu0  ;;  %v781_v49 = vsel %vm3459_vm14, %v2274_v47, 0.0 }
  0xdd   :  { %75 = vst.msk [vmem:[#allocation4 + $0x28] sm:$0xff] %vm37_vm2, %v1699_v9  ;;  %v2287_v11 = vsel %vm3438_vm15, %v2188_v52, -1e+30  ;;  %v188_v13 = vpop.f32.mrf.mxu1  ;;  %v2315_v25 = vsel %vm3441_vm7, %v176_v2, -1e+30 }
  0xde   :  { %436 = vmax.xlane.f32.xlu0 %v2184_v35  ;;  %420 = vmax.xlane.f32.xlu2 %v2192_v53  ;;  %76 = vst.msk [vmem:[#allocation4 + $0x30] sm:$0xff] %vm37_vm2, %v1699_v9  ;;  %v2309_v19 = vsel %vm3440_vm11, %v188_v13, -1e+30  ;;  %v778_v28 = vsel %vm3442_vm3, %v188_v13, 0.0 }
  0xdf   :  { %789 = vadd.xlane.f32.xlu1 %v772_v54  ;;  %77 = vst.msk [vmem:[#allocation4 + $0x38] sm:$0xff] %vm37_vm2, %v1699_v9 }
  0xe0   :  { %78 = vst.msk [vmem:[#allocation4 + $0x40] sm:$0xff] %vm37_vm2, %v1699_v9 }
  0xe1   :  { %79 = vst.msk [vmem:[#allocation4 + $0x48] sm:$0xff] %vm37_vm2, %v1699_v9 }
  0xe2   :  { %80 = vst.msk [vmem:[#allocation4 + $0x50] sm:$0xff] %vm37_vm2, %v1699_v9 }
  0xe3   :  { %81 = vst.msk [vmem:[#allocation4 + $0x58] sm:$0xff] %vm37_vm2, %v1699_v9 }
  0xe4   :  { %v2218_v58 = vpop.f32.mrf.mxu3  ;;  %82 = vst.msk [vmem:[#allocation4 + $0x60] sm:$0xff] %vm37_vm2, %v1699_v9 }
  0xe5   :  { %83 = vst.msk [vmem:[#allocation4 + $0x68] sm:$0xff] %vm37_vm2, %v1699_v9  ;;  %v2335_v51 = vsel %vm2099_vm4, %v2218_v58, -1e+30  ;;  %vm3444_vm4 = vnez %v3382_v42 }
  0xe6   :  { %422 = vmax.xlane.f32.xlu0 %v2214_v56  ;;  %428 = vmax.xlane.f32.xlu2 %v2235_v62  ;;  %84 = vst.msk [vmem:[#allocation4 + $0x70] sm:$0xff] %vm37_vm2, %v1699_v9 }
  0xe7   :  { %444 = vmax.xlane.f32.xlu1 %v2223_v60  ;;  %85 = vst.msk [vmem:[#allocation4 + $0x78] sm:$0xff] %vm37_vm2, %v1699_v9 }
  0xe8   :  { %86 = vst.msk [vmem:[#allocation5] sm:$0xff] %vm37_vm2, %v1699_v9 }
  0xe9   :  { %87 = vst.msk [vmem:[#allocation5 + $0x8] sm:$0xff] %vm37_vm2, %v1699_v9 }
  0xea   :  { %89 = vst.msk [vmem:[#allocation5 + $0x18] sm:$0xff] %vm37_vm2, %v1699_v9 }
  0xeb   :  { %90 = vst.msk [vmem:[#allocation5 + $0x20] sm:$0xff] %vm37_vm2, %v1699_v9 }
  0xec   :  { %91 = vst.msk [vmem:[#allocation5 + $0x28] sm:$0xff] %vm37_vm2, %v1699_v9 }
  0xed   :  { %92 = vst.msk [vmem:[#allocation5 + $0x30] sm:$0xff] %vm37_vm2, %v1699_v9 }
  0xee   :  { %430 = vmax.xlane.f32.xlu0 %v2251_v20  ;;  %799 = vadd.xlane.f32.xlu2 %v777_v4  ;;  %93 = vst.msk [vmem:[#allocation5 + $0x38] sm:$0xff] %vm37_vm2, %v1699_v9 }
  0xef   :  { %805 = vadd.xlane.f32.xlu1 %v780_v1  ;;  %94 = vst.msk [vmem:[#allocation5 + $0x40] sm:$0xff] %vm37_vm2, %v1699_v9 }
  0xf0   :  { %v904_v7 = vpop.xlane.xlu1 %903  ;;  %95 = vst.msk [vmem:[#allocation5 + $0x48] sm:$0xff] %vm37_vm2, %v1699_v9 }
  0xf1   :  { %v933_v61 = vadd.f32 %v904_v7, %v853_v39  ;;  %96 = vst.msk [vmem:[#allocation5 + $0x50] sm:$0xff] %vm37_vm2, %v1699_v9  ;;  %v854_v22 = vld [vmem:[#allocation5 + $0x18] sm:$0xff]  ;;  %v2343_v39 = vpop.f32.mrf.mxu2 }
  0xf2   :  { %97 = vst.msk [vmem:[#allocation5 + $0x58] sm:$0xff] %vm37_vm2, %v1699_v9  ;;  %v855_v16 = vld [vmem:[#allocation5 + $0x20] sm:$0xff]  ;;  %v2349_v7 = vsel %vm3444_vm4, %v2343_v39, -1e+30 }
  0xf3   :  { %949 = vst.msk [vmem:[#allocation5 + $0x10] sm:$0xff] %vm37_vm2, %v933_v61  ;;  %v935_v3 = vadd.f32 %v908_v50, %v855_v16  ;;  %v856_v27 = vld [vmem:[#allocation5 + $0x28] sm:$0xff] }
  0xf4   :  { %98 = vst.msk [vmem:[#allocation5 + $0x60] sm:$0xff] %vm37_vm2, %v1699_v9  ;;  %v857_v44 = vld [vmem:[#allocation5 + $0x30] sm:$0xff] }
  0xf5   :  { %99 = vst.msk [vmem:[#allocation5 + $0x68] sm:$0xff] %vm37_vm2, %v1699_v9  ;;  %v858_v24 = vld [vmem:[#allocation5 + $0x38] sm:$0xff] }
  0xf6   :  { %791 = vadd.xlane.f32.xlu0 %v773_v12  ;;  %446 = vmax.xlane.f32.xlu2 %v2287_v11  ;;  %100 = vst.msk [vmem:[#allocation5 + $0x70] sm:$0xff] %vm37_vm2, %v1699_v9  ;;  %v859_v29 = vld [vmem:[#allocation5 + $0x40] sm:$0xff] }
  0xf7   :  { %438 = vmax.xlane.f32.xlu1 %v2282_v10  ;;  %101 = vst.msk [vmem:[#allocation5 + $0x78] sm:$0xff] %vm37_vm2, %v1699_v9  ;;  %v774_v9 = vsel %vm3443_vm12, %v176_v2, 0.0  ;;  %v860_v50 = vld [vmem:[#allocation5 + $0x48] sm:$0xff] }
  0xf8   :  { %v910_v18 = vpop.xlane.xlu1 %909  ;;  %v906_v57 = vpop.xlane.xlu0 %905  ;;  %951 = vst.msk [vmem:[#allocation5 + $0x20] sm:$0xff] %vm37_vm2, %v935_v3  ;;  %v861_v8 = vld [vmem:[#allocation5 + $0x50] sm:$0xff] }
  0xf9   :  { %v936_v36 = vadd.f32 %v910_v18, %v856_v27  ;;  %v934_v5 = vadd.f32 %v906_v57, %v854_v22  ;;  %v862_v54 = vld [vmem:[#allocation5 + $0x58] sm:$0xff]  ;;  %v851_v22 = vld [vmem:[#allocation5] sm:$0xff]  ;;  %v852_v27 = vld [vmem:[#allocation5 + $0x8] sm:$0xff] }
  0xfa   :  { %v2588_v26 = vld [vmem:[#allocation5 + $0x10] sm:$0xff] }
  0xfb   :  { %952 = vst.msk [vmem:[#allocation5 + $0x28] sm:$0xff] %vm37_vm2, %v936_v36  ;;  %v863_v2 = vld [vmem:[#allocation5 + $0x60] sm:$0xff]  ;;  %v2594_v59 = vmax.f32 %v2588_v26, 1.0 }
  0xfc   :  { %950 = vst.msk [vmem:[#allocation5 + $0x18] sm:$0xff] %vm37_vm2, %v934_v5  ;;  %v864_v18 = vld [vmem:[#allocation5 + $0x68] sm:$0xff] }
  0xfd   :  { %v865_v13 = vld [vmem:[#allocation5 + $0x70] sm:$0xff] }
  0xfe   :  { %801 = vadd.xlane.f32.xlu0 %v778_v28  ;;  %424 = vmax.xlane.f32.xlu2 %v2315_v25  ;;  %v866_v36 = vld [vmem:[#allocation5 + $0x78] sm:$0xff] }
  0xff   :  { %432 = vmax.xlane.f32.xlu1 %v2309_v19 }
 0x100   :  { %v914_v32 = vpop.xlane.xlu2 %913  ;;  %v916_v34 = vpop.xlane.xlu1 %915 }
 0x101   :  { %v938_v6 = vadd.f32 %v914_v32, %v858_v24  ;;  %v939_v45 = vadd.f32 %v916_v34, %v859_v29  ;;  %v912_v46 = vpop.xlane.xlu0 %911  ;;  %v1700_v34 = vmov -1e+30  }
 0x102   :  { %v937_v48 = vadd.f32 %v912_v46, %v857_v44  ;;  %38 = vst.msk [vmem:[#allocation2] sm:$0xff] %vm37_vm2, %v1700_v34 }
 0x103   :  { %954 = vst.msk [vmem:[#allocation5 + $0x38] sm:$0xff] %vm37_vm2, %v938_v6  ;;  %v755_v6 = vld [vmem:[#allocation4] sm:$0xff] }
 0x104   :  { %955 = vst.msk [vmem:[#allocation5 + $0x40] sm:$0xff] %vm37_vm2, %v939_v45 }
 0x105   :  { %953 = vst.msk [vmem:[#allocation5 + $0x30] sm:$0xff] %vm37_vm2, %v937_v48 }
 0x106   :  { %448 = vmax.xlane.f32.xlu0 %v2335_v51  ;;  %793 = vadd.xlane.f32.xlu2 %v774_v9  ;;  %39 = vst.msk [vmem:[#allocation2 + $0x8] sm:$0xff] %vm37_vm2, %v1700_v34 }
 0x107   :  { %40 = vst.msk [vmem:[#allocation2 + $0x10] sm:$0xff] %vm37_vm2, %v1700_v34 }
 0x108   :  { %v920_v55 = vpop.xlane.xlu2 %919  ;;  %v922_v0 = vpop.xlane.xlu1 %921  ;;  %41 = vst.msk [vmem:[#allocation2 + $0x18] sm:$0xff] %vm37_vm2, %v1700_v34 }
 0x109   :  { %v941_v1 = vadd.f32 %v920_v55, %v861_v8  ;;  %v942_v21 = vadd.f32 %v922_v0, %v862_v54  ;;  %v918_v4 = vpop.xlane.xlu0 %917  ;;  %42 = vst.msk [vmem:[#allocation2 + $0x20] sm:$0xff] %vm37_vm2, %v1700_v34  ;;  %v2376_v45 = vld [vmem:[#allocation2] sm:$0xff] }
 0x10a   :  { %v940_v57 = vadd.f32 %v918_v4, %v860_v50  ;;  %43 = vst.msk [vmem:[#allocation2 + $0x28] sm:$0xff] %vm37_vm2, %v1700_v34 }
 0x10b   :  { %957 = vst.msk [vmem:[#allocation5 + $0x50] sm:$0xff] %vm37_vm2, %v941_v1 }
 0x10c   :  { %958 = vst.msk [vmem:[#allocation5 + $0x58] sm:$0xff] %vm37_vm2, %v942_v21 }
 0x10d   :  { %956 = vst.msk [vmem:[#allocation5 + $0x48] sm:$0xff] %vm37_vm2, %v940_v57 }
 0x10e   :  { %440 = vmax.xlane.f32.xlu2 %v2349_v7  ;;  %44 = vst.msk [vmem:[#allocation2 + $0x30] sm:$0xff] %vm37_vm2, %v1700_v34 }
 0x10f   :  { %45 = vst.msk [vmem:[#allocation2 + $0x38] sm:$0xff] %vm37_vm2, %v1700_v34 }
 0x110   :  { %v926_v30 = vpop.xlane.xlu2 %925  ;;  %v928_v61 = vpop.xlane.xlu1 %927  ;;  %46 = vst.msk [vmem:[#allocation2 + $0x40] sm:$0xff] %vm37_vm2, %v1700_v34  ;;  %v2391_v1 = vld [vmem:[#allocation2 + $0x20] sm:$0xff] }
 0x111   :  { %v924_v12 = vpop.xlane.xlu0 %923  ;;  %v944_v42 = vadd.f32 %v926_v30, %v864_v18  ;;  %v945_v5 = vadd.f32 %v928_v61, %v865_v13  ;;  %47 = vst.msk [vmem:[#allocation2 + $0x48] sm:$0xff] %vm37_vm2, %v1700_v34 }
 0x112   :  { %v943_v24 = vadd.f32 %v924_v12, %v863_v2  ;;  %48 = vst.msk [vmem:[#allocation2 + $0x50] sm:$0xff] %vm37_vm2, %v1700_v34  ;;  %v760_v2 = vld [vmem:[#allocation4 + $0x28] sm:$0xff] }
 0x113   :  { %960 = vst.msk [vmem:[#allocation5 + $0x68] sm:$0xff] %vm37_vm2, %v944_v42 }
 0x114   :  { %961 = vst.msk [vmem:[#allocation5 + $0x70] sm:$0xff] %vm37_vm2, %v945_v5 }
 0x115   :  { %959 = vst.msk [vmem:[#allocation5 + $0x60] sm:$0xff] %vm37_vm2, %v943_v24 }
 0x116   :  { %49 = vst.msk [vmem:[#allocation2 + $0x58] sm:$0xff] %vm37_vm2, %v1700_v34 }
 0x117   :  { %50 = vst.msk [vmem:[#allocation2 + $0x60] sm:$0xff] %vm37_vm2, %v1700_v34  ;;  %v2389_v0 = vld [vmem:[#allocation2 + $0x40] sm:$0xff] }
 0x118   :  { %v900_v16 = vpop.xlane.xlu2 %899  ;;  %v902_v3 = vpop.xlane.xlu1 %901  ;;  %51 = vst.msk [vmem:[#allocation2 + $0x68] sm:$0xff] %vm37_vm2, %v1700_v34  ;;  %v2420_v24 = vld [vmem:[#allocation2 + $0x48] sm:$0xff] }
 0x119   :  { %v930_v28 = vpop.xlane.xlu0 %929  ;;  %v931_v29 = vadd.f32 %v900_v16, %v851_v22  ;;  %v932_v44 = vadd.f32 %v902_v3, %v852_v27  ;;  %52 = vst.msk [vmem:[#allocation2 + $0x70] sm:$0xff] %vm37_vm2, %v1700_v34  ;;  %v763_v16 = vld [vmem:[#allocation4 + $0x40] sm:$0xff]  ;;  %v2483_v18 = vld [vmem:[#allocation2 + $0x50] sm:$0xff] }
 0x11a   :  { %v946_v32 = vadd.f32 %v930_v28, %v866_v36  ;;  %53 = vst.msk [vmem:[#allocation2 + $0x78] sm:$0xff] %vm37_vm2, %v1700_v34  ;;  %v759_v22 = vld [vmem:[#allocation4 + $0x20] sm:$0xff] }
 0x11b   :  { %947 = vst.msk [vmem:[#allocation5] sm:$0xff] %vm37_vm2, %v931_v29  ;;  %v756_v29 = vld [vmem:[#allocation4 + $0x8] sm:$0xff] }
 0x11c   :  { %948 = vst.msk [vmem:[#allocation5 + $0x8] sm:$0xff] %vm37_vm2, %v932_v44  ;;  %v2422_v44 = vld [vmem:[#allocation2 + $0x8] sm:$0xff] }
 0x11d   :  { %962 = vst.msk [vmem:[#allocation5 + $0x78] sm:$0xff] %vm37_vm2, %v946_v32  ;;  %v2536_v14 = vld [vmem:[#allocation2 + $0x58] sm:$0xff] }
 0x11e   :  { %v2387_v55 = vld [vmem:[#allocation2 + $0x60] sm:$0xff]  ;;  %3453 = vst [vmem:[#allocation17_spill] sm:$0xff] %v2536_v14 }
 0x139   :  { %v788_v46 = vpop.xlane.xlu2 %787  ;;  %v419_v48 = vpop.xlane.xlu1 %418 }
 0x13a   :  { %v819_v9 = vadd.f32 %v788_v46, %v755_v6  ;;  %v2379_v8 = vmax.f32 %v2376_v45, %v419_v48 }
 0x13c   :  { %835 = vst.msk [vmem:[#allocation4] sm:$0xff] %vm37_vm2, %v819_v9  ;;  %548 = vperm.xlu1 %1538, %v2379_v8  }
 0x13d   :  { %739 = vst.msk [vmem:[#allocation2] sm:$0xff] %vm37_vm2, %v2379_v8 }
 0x141   :  { %v443_v21 = vpop.xlane.xlu0 %442  ;;  %v435_v30 = vpop.xlane.xlu2 %434 }
 0x142   :  { %v2394_v4 = vmax.f32 %v2387_v55, %v443_v21  ;;  %v427_v61 = vpop.xlane.xlu1 %426  ;;  %v2397_v12 = vmax.f32 %v2389_v0, %v435_v30 }
 0x143   :  { %v2400_v50 = vmax.f32 %v2391_v1, %v427_v61  ;;  %v2441_v61 = vld [vmem:[#allocation2 + $0x10] sm:$0xff] }
 0x144   :  { %751 = vst.msk [vmem:[#allocation2 + $0x60] sm:$0xff] %vm37_vm2, %v2394_v4  ;;  %588 = vperm.xlu2 %1539, %v2397_v12   ;;  %608 = vperm.xlu1 %1538, %v2394_v4   ;;  %v3461_v63 = vsub.f32 %v2389_v0, %v2397_v12 }
 0x145   :  { %747 = vst.msk [vmem:[#allocation2 + $0x40] sm:$0xff] %vm37_vm2, %v2397_v12  ;;  %568 = vperm.xlu0 %1537, %v2400_v50  }
 0x146   :  { %743 = vst.msk [vmem:[#allocation2 + $0x20] sm:$0xff] %vm37_vm2, %v2400_v50 }
 0x149   :  { %v798_v3 = vpop.xlane.xlu0 %797  ;;  %v804_v42 = vpop.xlane.xlu2 %803 }
 0x14a   :  { %v824_v27 = vadd.f32 %v798_v3, %v760_v2  ;;  %v796_v28 = vpop.xlane.xlu1 %795  ;;  %v827_v36 = vadd.f32 %v804_v42, %v763_v16  ;;  %v2443_v2 = vld [vmem:[#allocation2 + $0x68] sm:$0xff] }
 0x14b   :  { %v823_v5 = vadd.f32 %v796_v28, %v759_v22  ;;  %v2445_v16 = vld [vmem:[#allocation2 + $0x28] sm:$0xff] }
 0x14c   :  { %840 = vst.msk [vmem:[#allocation4 + $0x28] sm:$0xff] %vm37_vm2, %v824_v27 }
 0x14d   :  { %843 = vst.msk [vmem:[#allocation4 + $0x40] sm:$0xff] %vm37_vm2, %v827_v36 }
 0x14e   :  { %839 = vst.msk [vmem:[#allocation4 + $0x20] sm:$0xff] %vm37_vm2, %v823_v5 }
 0x151   :  { %v437_v32 = vpop.xlane.xlu0 %436  ;;  %v421_v46 = vpop.xlane.xlu2 %420 }
 0x152   :  { %v2425_v34 = vmax.f32 %v2420_v24, %v437_v32  ;;  %v790_v6 = vpop.xlane.xlu1 %789  ;;  %v2428_v9 = vmax.f32 %v2422_v44, %v421_v46  ;;  %v764_v46 = vld [vmem:[#allocation4 + $0x48] sm:$0xff]  ;;  %v2485_v32 = vld [vmem:[#allocation2 + $0x70] sm:$0xff] }
 0x153   :  { %v820_v48 = vadd.f32 %v790_v6, %v756_v29  ;;  %v2470_v6 = vld [vmem:[#allocation2 + $0x30] sm:$0xff]  ;;  %3445 = vst [vmem:[#allocation9_spill] sm:$0xff] %v2485_v32 }
 0x154   :  { %748 = vst.msk [vmem:[#allocation2 + $0x48] sm:$0xff] %vm37_vm2, %v2425_v34  ;;  %593 = vperm.xlu1 %1538, %v2425_v34   ;;  %553 = vperm.xlu2 %1539, %v2428_v9  }
 0x155   :  { %836 = vst.msk [vmem:[#allocation4 + $0x8] sm:$0xff] %vm37_vm2, %v820_v48  ;;  %v761_v48 = vld [vmem:[#allocation4 + $0x30] sm:$0xff] }
 0x156   :  { %740 = vst.msk [vmem:[#allocation2 + $0x8] sm:$0xff] %vm37_vm2, %v2428_v9 }
 0x159   :  { %v423_v22 = vpop.xlane.xlu0 %422  ;;  %v429_v42 = vpop.xlane.xlu2 %428 }
 0x15a   :  { %v2448_v3 = vmax.f32 %v2441_v61, %v423_v22  ;;  %v445_v27 = vpop.xlane.xlu1 %444  ;;  %v2454_v36 = vmax.f32 %v2445_v16, %v429_v42 }
 0x15b   :  { %v2451_v28 = vmax.f32 %v2443_v2, %v445_v27 }
 0x15c   :  { %741 = vst.msk [vmem:[#allocation2 + $0x10] sm:$0xff] %vm37_vm2, %v2448_v3  ;;  %573 = vperm.xlu2 %1539, %v2454_v36  }
 0x15d   :  { %752 = vst.msk [vmem:[#allocation2 + $0x68] sm:$0xff] %vm37_vm2, %v2451_v28  ;;  %613 = vperm.xlu0 %1537, %v2451_v28  }
 0x15e   :  { %744 = vst.msk [vmem:[#allocation2 + $0x28] sm:$0xff] %vm37_vm2, %v2454_v36 }
 0x161   :  { %v431_v22 = vpop.xlane.xlu0 %430  ;;  %v800_v5 = vpop.xlane.xlu2 %799 }
 0x162   :  { %v2473_v27 = vmax.f32 %v2470_v6, %v431_v22  ;;  %v806_v42 = vpop.xlane.xlu1 %805  ;;  %v825_v21 = vadd.f32 %v800_v5, %v761_v48  ;;  %v757_v22 = vld [vmem:[#allocation4 + $0x10] sm:$0xff] }
 0x163   :  { %v828_v29 = vadd.f32 %v806_v42, %v764_v46 }
 0x164   :  { %745 = vst.msk [vmem:[#allocation2 + $0x30] sm:$0xff] %vm37_vm2, %v2473_v27  ;;  %578 = vperm.xlu1 %1538, %v2473_v27  }
 0x165   :  { %844 = vst.msk [vmem:[#allocation4 + $0x48] sm:$0xff] %vm37_vm2, %v828_v29  ;;  %558 = vperm.xlu0 %1537, %v2448_v3  }
 0x166   :  { %841 = vst.msk [vmem:[#allocation4 + $0x30] sm:$0xff] %vm37_vm2, %v825_v21 }
 0x169   :  { %v792_v5 = vpop.xlane.xlu0 %791  ;;  %v447_v42 = vpop.xlane.xlu2 %446 }
 0x16a   :  { %v821_v46 = vadd.f32 %v792_v5, %v757_v22  ;;  %v439_v48 = vpop.xlane.xlu1 %438  ;;  %v2491_v13 = vmax.f32 %v2485_v32, %v447_v42  ;;  %v762_v22 = vld [vmem:[#allocation4 + $0x38] sm:$0xff] }
 0x16b   :  { %v2488_v30 = vmax.f32 %v2483_v18, %v439_v48  ;;  %v2504_v5 = vld [vmem:[#allocation2 + $0x38] sm:$0xff] }
 0x16c   :  { %3446 = vst [vmem:[#allocation10_spill] sm:$0xff] %v2491_v13  ;;  %618 = vperm.xlu2 %1539, %v2491_v13  }
 0x16d   :  { %837 = vst.msk [vmem:[#allocation4 + $0x10] sm:$0xff] %vm37_vm2, %v821_v46  ;;  %598 = vperm.xlu0 %1537, %v2488_v30   ;;  %v2506_v46 = vld [vmem:[#allocation2 + $0x18] sm:$0xff] }
 0x16e   :  { %749 = vst.msk [vmem:[#allocation2 + $0x50] sm:$0xff] %vm37_vm2, %v2488_v30 }
 0x16f   :  { %753 = vst.msk [vmem:[#allocation2 + $0x70] sm:$0xff] %vm37_vm2, %v2491_v13 }
 0x170   :  { %3447 = vst [vmem:[#allocation11_spill] sm:$0xff] %v2504_v5 }
 0x171   :  { %3448 = vst [vmem:[#allocation12_spill] sm:$0xff] %v2506_v46  ;;  %v802_v48 = vpop.xlane.xlu0 %801  ;;  %v425_v54 = vpop.xlane.xlu2 %424 }
 0x172   :  { %v826_v42 = vadd.f32 %v802_v48, %v762_v22  ;;  %v433_v21 = vpop.xlane.xlu1 %432  ;;  %v2512_v29 = vmax.f32 %v2506_v46, %v425_v54  ;;  %v2525_v54 = vld [vmem:[#allocation2 + $0x78] sm:$0xff] }
 0x173   :  { %v2509_v57 = vmax.f32 %v2504_v5, %v433_v21  ;;  %3451 = vst [vmem:[#allocation15_spill] sm:$0xff] %v2525_v54  ;;  %v758_v21 = vld [vmem:[#allocation4 + $0x18] sm:$0xff] }
 0x174   :  { %3450 = vst [vmem:[#allocation14_spill] sm:$0xff] %v2512_v29  ;;  %563 = vperm.xlu1 %1538, %v2512_v29  }
 0x175   :  { %3449 = vst [vmem:[#allocation13_spill] sm:$0xff] %v2509_v57  ;;  %583 = vperm.xlu0 %1537, %v2509_v57  }
 0x176   :  { %842 = vst.msk [vmem:[#allocation4 + $0x38] sm:$0xff] %vm37_vm2, %v826_v42 }
 0x177   :  { %746 = vst.msk [vmem:[#allocation2 + $0x38] sm:$0xff] %vm37_vm2, %v2509_v57 }
 0x178   :  { %742 = vst.msk [vmem:[#allocation2 + $0x18] sm:$0xff] %vm37_vm2, %v2512_v29 }
 0x179   :  { %v449_v22 = vpop.xlane.xlu0 %448  ;;  %v794_v42 = vpop.xlane.xlu2 %793 }
 0x17a   :  { %v2528_v48 = vmax.f32 %v2525_v54, %v449_v22  ;;  %v822_v23 = vadd.f32 %v794_v42, %v758_v21 }
 0x17c   :  { %3452 = vst [vmem:[#allocation16_spill] sm:$0xff] %v2528_v48  ;;  %623 = vperm.xlu1 %1538, %v2528_v48  }
 0x17d   :  { %754 = vst.msk [vmem:[#allocation2 + $0x78] sm:$0xff] %vm37_vm2, %v2528_v48 }
 0x17e   :  { %838 = vst.msk [vmem:[#allocation4 + $0x18] sm:$0xff] %vm37_vm2, %v822_v23 }
 0x181   :  { %v441_v29 = vpop.xlane.xlu2 %440 }
 0x182   :  { %v2539_v46 = vmax.f32 %v2536_v14, %v441_v29 }
 0x184   :  { %3454 = vst [vmem:[#allocation18_spill] sm:$0xff] %v2539_v46  ;;  %603 = vperm.xlu2 %1539, %v2539_v46  }
 0x185   :  { %750 = vst.msk [vmem:[#allocation2 + $0x58] sm:$0xff] %vm37_vm2, %v2539_v46 }
 0x19e   :  { %v589_v21 = vpop.permute.xlu2 %588 }
 0x19f   :  { %v634_v42 = vsub.f32 %v2141_v41, %v589_v21 }
 0x1a1   :  { %v658_v23 = vmul.f32 1.442695, %v634_v42 }
 0x1a3   :  { %1541 = vpow2.f32 %v658_v23 }
 0x1a9   :  { %v1542_v43 = vpop.eup %1541 }
 0x1aa   :  { %690 = vadd.xlane.f32.xlu1 %v1542_v43 }
 0x1ae   :  { %v554_v48 = vpop.permute.xlu2 %553  ;;  %v549_v54 = vpop.permute.xlu1 %548 }
 0x1af   :  { %v626_v29 = vsub.f32 %v2125_v31, %v549_v54  ;;  %v627_v43 = vsub.f32 %v2192_v53, %v554_v48 }
 0x1b1   :  { %v642_v57 = vmul.f32 1.442695, %v626_v29  ;;  %v644_v31 = vmul.f32 1.442695, %v627_v43 }
 0x1b3   :  { %1543 = vpow2.f32 %v642_v57 }
 0x1b6   :  { %v574_v22 = vpop.permute.xlu2 %573  ;;  %v609_v46 = vpop.permute.xlu1 %608 }
 0x1b7   :  { %v569_v5 = vpop.permute.xlu0 %568  ;;  %v631_v13 = vsub.f32 %v2235_v62, %v574_v22  ;;  %v638_v32 = vsub.f32 %v2137_v40, %v609_v46 }
 0x1b8   :  { %v630_v14 = vsub.f32 %v2132_v38, %v569_v5 }
 0x1b9   :  { %v652_v21 = vmul.f32 1.442695, %v631_v13  ;;  %v1544_v42 = vpop.eup %1543  ;;  %v666_v23 = vmul.f32 1.442695, %v638_v32 }
 0x1ba   :  { %v650_v41 = vmul.f32 1.442695, %v630_v14  ;;  %674 = vadd.xlane.f32.xlu0 %v1544_v42 }
 0x1bc   :  { %1545 = vpow2.f32 %v650_v41 }
 0x1bd   :  { %1547 = vpow2.f32 %v652_v21 }
 0x1be   :  { %1549 = vpow2.f32 %v666_v23 }
 0x1bf   :  { %1551 = vpow2.f32 %v644_v31 }
 0x1c2   :  { %v1546_v57 = vpop.eup %1545 }
 0x1c3   :  { %v1548_v54 = vpop.eup %1547  ;;  %682 = vadd.xlane.f32.xlu2 %v1546_v57 }
 0x1c4   :  { %v1550_v38 = vpop.eup %1549  ;;  %684 = vadd.xlane.f32.xlu1 %v1548_v54 }
 0x1c5   :  { %698 = vadd.xlane.f32.xlu0 %v1550_v38  ;;  %v1552_v13 = vpop.eup %1551 }
 0x1c6   :  { %v594_v62 = vpop.permute.xlu1 %593  ;;  %v619_v41 = vpop.permute.xlu2 %618 }
 0x1c7   :  { %v635_v40 = vsub.f32 %v2184_v35, %v594_v62  ;;  %v640_v43 = vsub.f32 %v2287_v11, %v619_v41 }
 0x1c9   :  { %v660_v14 = vmul.f32 1.442695, %v635_v40 }
 0x1cb   :  { %1553 = vpow2.f32 %v660_v14  ;;  %676 = vadd.xlane.f32.xlu2 %v1552_v13 }
 0x1cf   :  { %v614_v53 = vpop.permute.xlu0 %613 }
 0x1d0   :  { %v639_v32 = vsub.f32 %v2223_v60, %v614_v53  ;;  %v670_v60 = vmul.f32 1.442695, %v640_v43 }
 0x1d1   :  { %v1554_v5 = vpop.eup %1553 }
 0x1d2   :  { %v668_v46 = vmul.f32 1.442695, %v639_v32  ;;  %692 = vadd.xlane.f32.xlu0 %v1554_v5 }
 0x1d4   :  { %1555 = vpow2.f32 %v668_v46 }
 0x1d6   :  { %v579_v48 = vpop.permute.xlu1 %578 }
 0x1d7   :  { %v632_v22 = vsub.f32 %v2251_v20, %v579_v48  ;;  %v559_v29 = vpop.permute.xlu0 %558 }
 0x1d8   :  { %v628_v21 = vsub.f32 %v2214_v56, %v559_v29 }
 0x1d9   :  { %v654_v42 = vmul.f32 1.442695, %v632_v22 }
 0x1da   :  { %v1556_v35 = vpop.eup %1555  ;;  %v646_v23 = vmul.f32 1.442695, %v628_v21 }
 0x1db   :  { %1557 = vpow2.f32 %v654_v42  ;;  %700 = vadd.xlane.f32.xlu2 %v1556_v35  ;;  %v3456_v42 = vsel %vm2079_vm8, %v2128_v37, 0.0  ;;  %v3458_v35 = vsel %vm2112_vm9, %v2218_v58, 0.0  ;;  %v498_v37 = vmul.f32 1.442695, %v3461_v63 }
 0x1dc   :  { %1559 = vpow2.f32 %v646_v23  ;;  %v3462_v23 = vsub.f32 %v2376_v45, %v2379_v8  ;;  %v2620_v8 = vld [vmem:[#allocation5 + $0x28] sm:$0xff] }
 0x1dd   :  { %1561 = vpow2.f32 %v670_v60 }
 0x1de   :  { %v604_v54 = vpop.permute.xlu2 %603  ;;  %v482_v43 = vmul.f32 1.442695, %v3462_v23 }
 0x1df   :  { %v599_v31 = vpop.permute.xlu0 %598  ;;  %v637_v56 = vsub.f32 %v2349_v7, %v604_v54  ;;  %v2610_v54 = vld [vmem:[#allocation5] sm:$0xff] }
 0x1e0   :  { %v636_v57 = vsub.f32 %v2282_v10, %v599_v31  ;;  %v2606_v31 = vld [vmem:[#allocation5 + $0x20] sm:$0xff]  ;;  %v2618_v45 = vmax.f32 %v2610_v54, 1.0 }
 0x1e1   :  { %v1558_v38 = vpop.eup %1557  ;;  %v664_v40 = vmul.f32 1.442695, %v637_v56  ;;  %v3463_v56 = vsub.f32 %v2391_v1, %v2400_v50  ;;  %v514_v1 = vld [vmem:[#allocation3] sm:$0xff] }
 0x1e2   :  { %v1560_v62 = vpop.eup %1559  ;;  %v662_v20 = vmul.f32 1.442695, %v636_v57  ;;  %686 = vadd.xlane.f32.xlu0 %v1558_v38  ;;  %vm1083_vm4 = vweird.f32 %v2618_v45 }
 0x1e3   :  { %678 = vadd.xlane.f32.xlu1 %v1560_v62  ;;  %v1562_v32 = vpop.eup %1561  ;;  %v2615_v62 = vmax.f32 %v2606_v31, 1.0 }
 0x1e4   :  { %1563 = vpow2.f32 %v662_v20 }
 0x1e5   :  { %1565 = vpow2.f32 %v664_v40  ;;  %v490_v40 = vmul.f32 1.442695, %v3463_v56  ;;  %vm1139_vm5 = vweird.f32 %v2615_v62 }
 0x1e6   :  { %v564_v11 = vpop.permute.xlu1 %563 }
 0x1e7   :  { %v584_v14 = vpop.permute.xlu0 %583  ;;  %v629_v53 = vsub.f32 %v2315_v25, %v564_v11  ;;  %v782_v25 = vsel %vm3455_vm0, %v2343_v39, 0.0 }
 0x1e8   :  { %v633_v13 = vsub.f32 %v2309_v19, %v584_v14 }
 0x1e9   :  { %v648_v46 = vmul.f32 1.442695, %v629_v53 }
 0x1ea   :  { %v1564_v5 = vpop.eup %1563  ;;  %v656_v10 = vmul.f32 1.442695, %v633_v13  ;;  %v3464_v13 = vsub.f32 %v2445_v16, %v2454_v36  ;;  %v1117_v36 = vand.u32 2147483648, %v2594_v59 }
 0x1eb   :  { %694 = vadd.xlane.f32.xlu2 %v1564_v5  ;;  %702 = vadd.xlane.f32.xlu1 %v1562_v32  ;;  %v1566_v22 = vpop.eup %1565  ;;  %v3465_v32 = vsub.f32 %v2387_v55, %v2394_v4 }
 0x1ec   :  { %1567 = vpow2.f32 %v656_v10  ;;  %v492_v53 = vmul.f32 1.442695, %v3464_v13  ;;  %v2657_v63 = vor.u32 1.1754944e-38, %v1117_v36 }
 0x1ed   :  { %1569 = vpow2.f32 %v648_v46  ;;  %v506_v5 = vmul.f32 1.442695, %v3465_v32  ;;  %v2633_v46 = vmax.f32 %v2620_v8, 1.0  ;;  %v526_v32 = vld [vmem:[#allocation3 + $0x60] sm:$0xff] }
 0x1ee   :  { %v624_v48 = vpop.permute.xlu1 %623 }
 0x1ef   :  { %v641_v7 = vsub.f32 %v2335_v51, %v624_v48  ;;  %v785_v51 = vsel %vm3457_vm1, %v2188_v52, 0.0  ;;  %v2586_v52 = vld [vmem:[#allocation5 + $0x40] sm:$0xff]  ;;  %v2639_v48 = vld [vmem:[#allocation5 + $0x18] sm:$0xff]  ;;  %vm1153_vm15 = vweird.f32 %v2633_v46 }
 0x1f0   :  { %v2591_v58 = vmax.f32 %v2586_v52, 1.0 }
 0x1f1   :  { %v672_v41 = vmul.f32 1.442695, %v641_v7  ;;  %v2644_v7 = vld [vmem:[#allocation5 + $0x38] sm:$0xff] }
 0x1f2   :  { %v1568_v29 = vpop.eup %1567  ;;  %vm1195_vm8 = vweird.f32 %v2591_v58 }
 0x1f3   :  { %v1570_v21 = vpop.eup %1569  ;;  %688 = vadd.xlane.f32.xlu2 %v1568_v29  ;;  %696 = vadd.xlane.f32.xlu1 %v1566_v22  ;;  %1571 = vpow2.f32 %v672_v41  ;;  %v1199_v22 = vand.u32 2147483647, %v2591_v58  ;;  %v1201_v29 = vand.u32 2147483648, %v2591_v58 }
 0x1f4   :  { %680 = vadd.xlane.f32.xlu0 %v1570_v21  ;;  %1573 = vpow2.f32 %v498_v37  ;;  %v2660_v37 = vmax.f32 %v2639_v48, 1.0 }
 0x1f5   :  { %1575 = vrcp.f32 %v2591_v58  ;;  %v1202_v56 = vor.u32 1.1754944e-38, %v1201_v29  ;;  %vm2683_vm10 = vcmp.eq.f32.partialorder %v1199_v22, 8.507059e+37  ;;  %v3471_v22 = vsub.f32 %v2420_v24, %v2425_v34 }
 0x1f6   :  { %1577 = vrcp.f32 %v2594_v59 }
 0x1f7   :  { %1579 = vpow2.f32 %v482_v43  ;;  %v500_v29 = vmul.f32 1.442695, %v3471_v22 }
 0x1f9   :  { %v1572_v19 = vpop.eup %1571 }
 0x1fa   :  { %v1574_v47 = vpop.eup %1573 }
 0x1fb   :  { %809 = vadd.xlane.f32.xlu2 %v782_v25  ;;  %811 = vadd.xlane.f32.xlu1 %v3456_v42  ;;  %v538_v33 = vmul.f32 %v1574_v47, %v522_v15  ;;  %v2598_v12 = vpop.eup %1575  ;;  %v3466_v25 = vsub.f32 %v2422_v44, %v2428_v9  ;;  %v974_v44 = vld [vmem:[#allocation2 + $0x40] sm:$0xff] }
 0x1fc   :  { %704 = vadd.xlane.f32.xlu0 %v1572_v19  ;;  %v2604_v60 = vpop.eup %1577  ;;  %v1191_v57 = vmul.f32 %v2598_v12, %v2591_v58  ;;  %vm1196_vm9 = vweird.f32 %v2598_v12  ;;  %v518_v58 = vld [vmem:[#allocation3 + $0x20] sm:$0xff] }
 0x1fd   :  { %v1107_v38 = vmul.f32 %v2604_v60, %v2594_v59  ;;  %v1580_v10 = vpop.eup %1579  ;;  %v484_v42 = vmul.f32 1.442695, %v3466_v25  ;;  %vm2666_vm13 = vmor %vm1195_vm8, %vm1196_vm9  ;;  %vm1111_vm9 = vweird.f32 %v2594_v59 }
 0x1fe   :  { %v1192_v20 = vsub.f32 1.0, %v1191_v57  ;;  %v530_v55 = vmul.f32 %v1580_v10, %v514_v1  ;;  %v1145_v57 = vand.u32 2147483648, %v2615_v62  ;;  %v2694_v10 = vld [vmem:[#allocation5 + $0x30] sm:$0xff] }
 0x1ff   :  { %v1108_v11 = vsub.f32 1.0, %v1107_v38  ;;  %v1157_v38 = vand.u32 2147483647, %v2633_v46 }
 0x200   :  { %v1193_v50 = vmul.f32 %v2598_v12, %v1192_v20  ;;  %v1159_v20 = vand.u32 2147483648, %v2633_v46 }
 0x201   :  { %v1109_v16 = vmul.f32 %v2604_v60, %v1108_v11  ;;  %vm2785_vm12 = vcmp.eq.f32.partialorder %v1157_v38, 8.507059e+37 }
 0x202   :  { %v1194_v19 = vadd.f32 %v2598_v12, %v1193_v50 }
 0x203   :  { %815 = vadd.xlane.f32.xlu2 %v785_v51  ;;  %817 = vadd.xlane.f32.xlu1 %v3458_v35  ;;  %v2671_v15 = vadd.f32 %v2604_v60, %v1109_v16  ;;  %v1310_v16 = vld [vmem:[#allocation4 + $0x40] sm:$0xff] }
 0x204   :  { %807 = vadd.xlane.f32.xlu0 %v781_v49  ;;  %v1198_v13 = vsel %vm2666_vm13, %v2598_v12, %v1194_v19  ;;  %vm1112_vm13 = vweird.f32 %v2604_v60 }
 0x20c   :  { %813 = vadd.xlane.f32.xlu0 %v3460_v17 }
 0x21d   :  { %v691_v39 = vpop.xlane.xlu1 %690 }
 0x21e   :  { %v714_v0 = vadd.f32 %v691_v39, %v538_v33  ;;  %v1143_v33 = vand.u32 2147483647, %v2615_v62  ;;  %v2675_v39 = vmax.f32 %v2644_v7, 1.0 }
 0x220   :  { %731 = vst.msk [vmem:[#allocation3 + $0x40] sm:$0xff] %vm37_vm2, %v714_v0  ;;  %v2677_v0 = vld [vmem:[#allocation5 + $0x8] sm:$0xff]  ;;  %vm2779_vm3 = vcmp.eq.f32.partialorder %v1143_v33, 8.507059e+37  ;;  %v1087_v33 = vand.u32 2147483647, %v2618_v45 }
 0x221   :  { %v2699_v50 = vmax.f32 %v2677_v0, 1.0 }
 0x222   :  { %vm1088_vm8 = vcmp.eq.f32.partialorder %v1087_v33, 8.507059e+37 }
 0x227   :  { %v990_v14 = vld [vmem:[#allocation3 + $0x40] sm:$0xff] }
 0x228   :  { %1581 = vlog2.f32 %v990_v14 }
 0x229   :  { %1583 = vrcp.f32 %v2615_v62 }
 0x22a   :  { %1585 = vrcp.f32 %v2618_v45 }
 0x22b   :  { %1587 = vpow2.f32 %v490_v40  ;;  %v519_v40 = vld [vmem:[#allocation3 + $0x28] sm:$0xff] }
 0x22c   :  { %1589 = vpow2.f32 %v492_v53 }
 0x22d   :  { %1591 = vpow2.f32 %v506_v5  ;;  %v675_v41 = vpop.xlane.xlu0 %674 }
 0x22e   :  { %v1582_v4 = vpop.eup %1581  ;;  %1593 = vrcp.f32 %v2633_v46  ;;  %v706_v35 = vadd.f32 %v675_v41, %v530_v55  ;;  %v1203_v41 = vsel %vm2683_vm10, %v1202_v56, %v1198_v13  ;;  %v515_v13 = vld [vmem:[#allocation3 + $0x8] sm:$0xff] }
 0x22f   :  { %v2648_v21 = vpop.eup %1583  ;;  %v1015_v51 = vmul.f32 0.6931472, %v1582_v4  ;;  %1595 = vpow2.f32 %v484_v42 }
 0x230   :  { %v2654_v49 = vpop.eup %1585  ;;  %723 = vst.msk [vmem:[#allocation3] sm:$0xff] %vm37_vm2, %v706_v35  ;;  %1597 = vrcp.f32 %v2660_v37  ;;  %v1135_v12 = vmul.f32 %v2648_v21, %v2615_v62  ;;  %v2712_v35 = vmax.f32 %v2694_v10, 1.0  ;;  %vm1140_vm6 = vweird.f32 %v2648_v21 }
 0x231   :  { %v1588_v9 = vpop.eup %1587  ;;  %v1038_v23 = vadd.f32 %v1015_v51, %v974_v44  ;;  %v1079_v1 = vmul.f32 %v2654_v49, %v2618_v45  ;;  %1599 = vrcp.f32 %v2675_v39  ;;  %vm1084_vm7 = vweird.f32 %v2654_v49  ;;  %vm2821_vm1 = vmor %vm1139_vm5, %vm1140_vm6 }
 0x232   :  { %v1590_v43 = vpop.eup %1589  ;;  %v534_v36 = vmul.f32 %v1588_v9, %v518_v58  ;;  %v2715_v58 = vld [vmem:[#allocation5 + $0x48] sm:$0xff]  ;;  %1601 = vrcp.f32 %v2699_v50  ;;  %vm2805_vm0 = vmor %vm1083_vm4, %vm1084_vm7  ;;  %vm1125_vm6 = vweird.f32 %v2660_v37  ;;  %vm1167_vm4 = vweird.f32 %v2712_v35 }
 0x233   :  { %v1592_v14 = vpop.eup %1591  ;;  %v1326_v53 = vmul.f32 %v2586_v52, %v1038_v23  ;;  %v535_v4 = vmul.f32 %v1590_v43, %v519_v40  ;;  %v1131_v23 = vand.u32 2147483648, %v2660_v37  ;;  %v1080_v24 = vsub.f32 1.0, %v1079_v1 }
 0x234   :  { %v2691_v5 = vpop.eup %1593  ;;  %v542_v25 = vmul.f32 %v1592_v14, %v526_v32  ;;  %v1136_v40 = vsub.f32 1.0, %v1135_v12  ;;  %v1187_v14 = vand.u32 2147483648, %v2675_v39  ;;  %v2724_v32 = vor.u32 1.1754944e-38, %v1145_v57 }
 0x235   :  { %v1342_v52 = vsub.f32 %v1310_v16, %v1326_v53  ;;  %v1149_v51 = vmul.f32 %v2691_v5, %v2633_v46  ;;  %v1596_v56 = vpop.eup %1595  ;;  %v2726_v1 = vor.u32 1.1754944e-38, %v1159_v20  ;;  %v1081_v57 = vmul.f32 %v2654_v49, %v1080_v24 }
 0x236   :  { %v683_v55 = vpop.xlane.xlu2 %682  ;;  %v2721_v53 = vpop.eup %1597  ;;  %v531_v20 = vmul.f32 %v1596_v56, %v515_v13  ;;  %v1137_v22 = vmul.f32 %v2648_v21, %v1136_v40  ;;  %vm1154_vm11 = vweird.f32 %v2691_v5 }
 0x237   :  { %v710_v19 = vadd.f32 %v683_v55, %v534_v36  ;;  %v685_v42 = vpop.xlane.xlu1 %684  ;;  %v1358_v47 = vmul.f32 %v1342_v52, %v1203_v41  ;;  %v982_v34 = vld [vmem:[#allocation3] sm:$0xff]  ;;  %v2730_v36 = vpop.eup %1599  ;;  %v1150_v12 = vsub.f32 1.0, %v1149_v51  ;;  %v2735_v55 = vmax.f32 %v2715_v58, 1.0  ;;  %vm2834_vm14 = vmor %vm1153_vm15, %vm1154_vm11 }
 0x238   :  { %v699_v44 = vpop.xlane.xlu0 %698  ;;  %v711_v9 = vadd.f32 %v685_v42, %v535_v4  ;;  %1603 = vlog2.f32 %v982_v34  ;;  %v2744_v41 = vor.u32 1.1754944e-38, %v1187_v14  ;;  %v2754_v42 = vmul.f32 %v2721_v53, %v2660_v37  ;;  %v1302_v51 = vld [vmem:[#allocation4] sm:$0xff] }
 0x239   :  { %727 = vst.msk [vmem:[#allocation3 + $0x20] sm:$0xff] %vm37_vm2, %v710_v19  ;;  %v718_v43 = vadd.f32 %v699_v44, %v542_v25  ;;  %v1422_v11 = vmul.f32 -1.0, %v1358_v47  ;;  %1605 = vpow2.f32 %v500_v29  ;;  %v2742_v29 = vor.u32 1.1754944e-38, %v1131_v23  ;;  %v2750_v25 = vpop.eup %1601  ;;  %v2758_v44 = vld [vmem:[#allocation5 + $0x50] sm:$0xff] }
 0x23a   :  { %728 = vst.msk [vmem:[#allocation3 + $0x28] sm:$0xff] %vm37_vm2, %v711_v9  ;;  %1607 = vrcp.f32 %v2712_v35  ;;  %v1151_v24 = vmul.f32 %v2691_v5, %v1150_v12  ;;  %v2763_v34 = vmul.f32 %v2730_v36, %v2675_v39  ;;  %v1082_v13 = vadd.f32 %v2654_v49, %v1081_v57 }
 0x23b   :  { %735 = vst.msk [vmem:[#allocation3 + $0x60] sm:$0xff] %vm37_vm2, %v718_v43  ;;  %v1438_v4 = vmul.f32 0.0, %v1422_v11  ;;  %1609 = vrcp.f32 %v2735_v55  ;;  %v3473_v43 = vsub.f32 %v2443_v2, %v2451_v28  ;;  %v2769_v11 = vld [vmem:[#allocation5 + $0x58] sm:$0xff]  ;;  %v2790_v57 = vmax.f32 %v2758_v44, 1.0 }
 0x23c   :  { %3472 = vst [vmem:[#allocation19_spill] sm:$0xff] %v2758_v44  ;;  %v2801_v47 = vmax.f32 %v2769_v11, 1.0  ;;  %v1152_v52 = vadd.f32 %v2691_v5, %v1151_v24  ;;  %v1213_v62 = vand.u32 2147483647, %v2735_v55  ;;  %vm1098_vm10 = vweird.f32 %v2750_v25 }
 0x23d   :  { %1454 = vst.msk [vmem:[%s3321_s4 + $0x40] sm:$0xff] %vm37_vm2, %v1438_v4  ;;  %v508_v56 = vmul.f32 1.442695, %v3473_v43  ;;  %v1093_v43 = vmul.f32 %v2750_v25, %v2699_v50  ;;  %vm1209_vm5 = vweird.f32 %v2735_v55  ;;  %vm1097_vm15 = vweird.f32 %v2699_v50 }
 0x23e   :  { %v677_v19 = vpop.xlane.xlu2 %676  ;;  %v1604_v23 = vpop.eup %1603  ;;  %3474 = vst [vmem:[#allocation20_spill] sm:$0xff] %v2769_v11  ;;  %vm1126_vm11 = vweird.f32 %v2721_v53  ;;  %vm2906_vm7 = vmor %vm1097_vm15, %vm1098_vm10 }
 0x23f   :  { %v707_v9 = vadd.f32 %v677_v19, %v531_v20  ;;  %v1606_v14 = vpop.eup %1605  ;;  %v999_v4 = vmul.f32 0.6931472, %v1604_v23  ;;  %v523_v20 = vld [vmem:[#allocation3 + $0x48] sm:$0xff]  ;;  %v2775_v19 = vadd.f32 %v2648_v21, %v1137_v22  ;;  %v966_v23 = vld [vmem:[#allocation2] sm:$0xff]  ;;  %vm2956_vm15 = vmor %vm1111_vm9, %vm1112_vm13 }
 0x240   :  { %v986_v40 = vld [vmem:[#allocation3 + $0x20] sm:$0xff]  ;;  %v2793_v22 = vpop.eup %1607 }
 0x241   :  { %1611 = vlog2.f32 %v986_v40  ;;  %v987_v12 = vld [vmem:[#allocation3 + $0x28] sm:$0xff]  ;;  %724 = vst.msk [vmem:[#allocation3 + $0x8] sm:$0xff] %vm37_vm2, %v707_v9  ;;  %v1089_v9 = vand.u32 2147483648, %v2618_v45  ;;  %v1030_v38 = vadd.f32 %v999_v4, %v966_v23  ;;  %v1122_v40 = vsub.f32 1.0, %v2754_v42  ;;  %v2815_v16 = vpop.eup %1609 }
 0x242   :  { %1613 = vlog2.f32 %v987_v12  ;;  %v539_v12 = vmul.f32 %v1606_v14, %v523_v20  ;;  %v1178_v45 = vsub.f32 1.0, %v2763_v34  ;;  %v1086_v4 = vsel %vm2805_vm0, %v2654_v49, %v1082_v13 }
 0x243   :  { %1615 = vpow2.f32 %v508_v56  ;;  %v1318_v42 = vmul.f32 %v2610_v54, %v1030_v38  ;;  %v2827_v24 = vmul.f32 %v2793_v22, %v2712_v35  ;;  %v1090_v49 = vor.u32 1.1754944e-38, %v1089_v9 }
 0x244   :  { %1617 = vrcp.f32 %v2790_v57  ;;  %v1094_v14 = vsub.f32 1.0, %v1093_v43  ;;  %v3485_v13 = vsub.f32 %v2470_v6, %v2473_v27  ;;  %v3486_v9 = vsub.f32 %v2441_v61, %v2448_v3  ;;  %v970_v43 = vld [vmem:[#allocation2 + $0x20] sm:$0xff] }
 0x245   :  { %v693_v23 = vpop.xlane.xlu0 %692  ;;  %v1334_v38 = vsub.f32 %v1302_v51, %v1318_v42  ;;  %1619 = vrcp.f32 %v2801_v47  ;;  %v2847_v33 = vmul.f32 %v2721_v53, %v1122_v40  ;;  %v1205_v42 = vmul.f32 %v2815_v16, %v2735_v55  ;;  %v971_v51 = vld [vmem:[#allocation2 + $0x28] sm:$0xff] }
 0x246   :  { %v715_v54 = vadd.f32 %v693_v23, %v539_v12  ;;  %v494_v20 = vmul.f32 1.442695, %v3485_v13  ;;  %v486_v12 = vmul.f32 1.442695, %v3486_v9  ;;  %v1091_v23 = vsel %vm1088_vm8, %v1090_v49, %v1086_v4  ;;  %v527_v4 = vld [vmem:[#allocation3 + $0x68] sm:$0xff] }
 0x247   :  { %v1612_v34 = vpop.eup %1611  ;;  %v1350_v11 = vmul.f32 %v1334_v38, %v1091_v23  ;;  %v1142_v61 = vsel %vm2821_vm1, %v2648_v21, %v2775_v19  ;;  %v1156_v40 = vsel %vm2834_vm14, %v2691_v5, %v1152_v52  ;;  %v1095_v49 = vmul.f32 %v2750_v25, %v1094_v14  ;;  %v1306_v19 = vld [vmem:[#allocation4 + $0x20] sm:$0xff]  ;;  %v2882_v14 = vld [vmem:[#allocation5 + $0x70] sm:$0xff] }
 0x248   :  { %v1614_v17 = vpop.eup %1613  ;;  %v1007_v46 = vmul.f32 0.6931472, %v1612_v34  ;;  %v983_v44 = vld [vmem:[#allocation3 + $0x8] sm:$0xff]  ;;  %732 = vst.msk [vmem:[#allocation3 + $0x48] sm:$0xff] %vm37_vm2, %v715_v54  ;;  %v2862_v34 = vmul.f32 %v2730_v36, %v1178_v45  ;;  %v1164_v13 = vsub.f32 1.0, %v2827_v24  ;;  %v1147_v5 = vsel %vm2779_vm3, %v2724_v32, %v1142_v61 }
 0x249   :  { %v1009_v6 = vmul.f32 0.6931472, %v1614_v17  ;;  %1621 = vlog2.f32 %v983_v44  ;;  %v1616_v27 = vpop.eup %1615  ;;  %v1414_v17 = vmul.f32 -1.0, %v1350_v11  ;;  %v1161_v52 = vsel %vm2785_vm12, %v2726_v1, %v1156_v40  ;;  %v1307_v32 = vld [vmem:[#allocation4 + $0x28] sm:$0xff] }
 0x24a   :  { %v1034_v3 = vadd.f32 %v1007_v46, %v970_v43  ;;  %1623 = vpow2.f32 %v494_v20  ;;  %v2859_v54 = vpop.eup %1617  ;;  %v543_v45 = vmul.f32 %v1616_v27, %v527_v4  ;;  %v3487_v20 = vsub.f32 %v2483_v18, %v2488_v30  ;;  %v2890_v46 = vld [vmem:[#allocation5 + $0x60] sm:$0xff]  ;;  %v967_v30 = vld [vmem:[#allocation2 + $0x8] sm:$0xff] }
 0x24b   :  { %v1035_v44 = vadd.f32 %v1009_v6, %v971_v51  ;;  %1625 = vpow2.f32 %v486_v12  ;;  %1446 = vst.msk [vmem:[%s3321_s4] sm:$0xff] %vm37_vm2, %v1414_v17  ;;  %v2877_v56 = vpop.eup %1619  ;;  %v3488_v43 = vld [vmem:[#allocation9_spill] sm:$0xff]  ;;  %v3489_v6 = vld [vmem:[#allocation10_spill] sm:$0xff]  ;;  %v2896_v40 = vmax.f32 %v2882_v14, 1.0  ;;  %v1103_v18 = vand.u32 2147483648, %v2699_v50 }
 0x24c   :  { %v1322_v21 = vmul.f32 %v2606_v31, %v1034_v3  ;;  %v1206_v31 = vsub.f32 1.0, %v1205_v42  ;;  %v502_v38 = vmul.f32 1.442695, %v3487_v20  ;;  %v3490_v27 = vsub.f32 %v3488_v43, %v3489_v6  ;;  %v1303_v20 = vld [vmem:[#allocation4 + $0x8] sm:$0xff] }
 0x24d   :  { %v1323_v11 = vmul.f32 %v2620_v8, %v1035_v44  ;;  %v1096_v8 = vadd.f32 %v2750_v25, %v1095_v49  ;;  %v520_v49 = vld [vmem:[#allocation3 + $0x30] sm:$0xff]  ;;  %vm1181_vm3 = vweird.f32 %v2675_v39  ;;  %vm1182_vm12 = vweird.f32 %v2730_v36 }
 0x24e   :  { %v1338_v2 = vsub.f32 %v1306_v19, %v1322_v21  ;;  %v701_v28 = vpop.xlane.xlu2 %700  ;;  %v510_v42 = vmul.f32 1.442695, %v3490_v27  ;;  %v1207_v44 = vmul.f32 %v2815_v16, %v1206_v31  ;;  %v1101_v19 = vand.u32 2147483647, %v2699_v50  ;;  %v975_v21 = vld [vmem:[#allocation2 + $0x48] sm:$0xff] }
 0x24f   :  { %v1622_v1 = vpop.eup %1621  ;;  %v1339_v9 = vsub.f32 %v1307_v32, %v1323_v11  ;;  %v991_v12 = vld [vmem:[#allocation3 + $0x48] sm:$0xff]  ;;  %v719_v23 = vadd.f32 %v701_v28, %v543_v45  ;;  %v516_v11 = vld [vmem:[#allocation3 + $0x10] sm:$0xff]  ;;  %v2914_v45 = vmax.f32 %v2890_v46, 1.0  ;;  %v1100_v32 = vsel %vm2906_vm7, %v2750_v25, %v1096_v8 }
 0x250   :  { %v1354_v51 = vmul.f32 %v1338_v2, %v1147_v5  ;;  %v1001_v61 = vmul.f32 0.6931472, %v1622_v1  ;;  %1627 = vlog2.f32 %v991_v12  ;;  %v1624_v3 = vpop.eup %1623  ;;  %vm1210_vm0 = vweird.f32 %v2815_v16 }
 0x251   :  { %v1355_v4 = vmul.f32 %v1339_v9, %v1161_v52  ;;  %736 = vst.msk [vmem:[#allocation3 + $0x68] sm:$0xff] %vm37_vm2, %v719_v23  ;;  %v1626_v17 = vpop.eup %1625  ;;  %1629 = vpow2.f32 %v502_v38  ;;  %v536_v28 = vmul.f32 %v1624_v3, %v520_v49  ;;  %v1104_v1 = vor.u32 1.1754944e-38, %v1103_v18  ;;  %vm2984_vm9 = vmor %vm1209_vm5, %vm1210_vm0 }
 0x252   :  { %v1418_v5 = vmul.f32 -1.0, %v1354_v51  ;;  %v1031_v52 = vadd.f32 %v1001_v61, %v967_v30  ;;  %1631 = vpow2.f32 %v510_v42  ;;  %v532_v23 = vmul.f32 %v1626_v17, %v516_v11  ;;  %v3496_v42 = vld [vmem:[#allocation11_spill] sm:$0xff]  ;;  %v3497_v51 = vld [vmem:[#allocation13_spill] sm:$0xff]  ;;  %vm3017_vm0 = vmor %vm1125_vm6, %vm1126_vm11 }
 0x253   :  { %v1419_v31 = vmul.f32 -1.0, %v1355_v4  ;;  %v3493_v43 = vand.u32 2147483647, %v2594_v59  ;;  %v1208_v25 = vadd.f32 %v2815_v16, %v1207_v44  ;;  %vm1102_vm14 = vcmp.eq.f32.partialorder %v1101_v19, 8.507059e+37  ;;  %v3502_v19 = vld [vmem:[#allocation17_spill] sm:$0xff] }
 0x254   :  { %v1434_v2 = vmul.f32 0.0, %v1418_v5  ;;  %v1319_v50 = vmul.f32 %v2677_v0, %v1031_v52  ;;  %v3498_v61 = vsub.f32 %v3496_v42, %v3497_v51  ;;  %v1105_v18 = vsel %vm1102_vm14, %v1104_v1, %v1100_v32  ;;  %v3503_v5 = vld [vmem:[#allocation18_spill] sm:$0xff]  ;;  %v528_v42 = vld [vmem:[#allocation3 + $0x70] sm:$0xff]  ;;  %vm3025_vm14 = vmor %vm1181_vm3, %vm1182_vm12 }
 0x255   :  { %v1435_v9 = vmul.f32 0.0, %v1419_v31  ;;  %v687_v12 = vpop.xlane.xlu0 %686  ;;  %vm2924_vm1 = vcmp.eq.f32.partialorder %v3493_v43, 8.507059e+37  ;;  %v3499_v49 = vand.u32 2147483647, %v2660_v37  ;;  %vm1168_vm10 = vweird.f32 %v2793_v22 }
 0x256   :  { %v1628_v38 = vpop.eup %1627  ;;  %1450 = vst.msk [vmem:[%s3321_s4 + $0x20] sm:$0xff] %vm37_vm2, %v1434_v2  ;;  %v1335_v0 = vsub.f32 %v1303_v20, %v1319_v50  ;;  %v712_v8 = vadd.f32 %v687_v12, %v536_v28  ;;  %v679_v27 = vpop.xlane.xlu1 %678  ;;  %v496_v3 = vmul.f32 1.442695, %v3498_v61  ;;  %v1215_v44 = vand.u32 2147483648, %v2735_v55  ;;  %v3510_v20 = vld [vmem:[#allocation12_spill] sm:$0xff]  ;;  %v2997_v61 = vld [vmem:[#allocation5 + $0x68] sm:$0xff]  ;;  %vm3044_vm6 = vmor %vm1167_vm4, %vm1168_vm10 }
 0x257   :  { %1451 = vst.msk [vmem:[%s3321_s4 + $0x28] sm:$0xff] %vm37_vm2, %v1435_v9  ;;  %v1017_v30 = vmul.f32 0.6931472, %v1628_v38  ;;  %v708_v4 = vadd.f32 %v679_v27, %v532_v23  ;;  %vm2942_vm8 = vcmp.eq.f32.partialorder %v3499_v49, 8.507059e+37  ;;  %v3504_v52 = vsub.f32 %v3502_v19, %v3503_v5  ;;  %v1630_v32 = vpop.eup %1629  ;;  %v3511_v9 = vld [vmem:[#allocation14_spill] sm:$0xff]  ;;  %v524_v27 = vld [vmem:[#allocation3 + $0x50] sm:$0xff] }
 0x258   :  { %v1351_v31 = vmul.f32 %v1335_v0, %v1105_v18  ;;  %729 = vst.msk [vmem:[#allocation3 + $0x30] sm:$0xff] %vm37_vm2, %v712_v8  ;;  %v2962_v50 = vadd.f32 %v2721_v53, %v2847_v33  ;;  %v3507_v28 = vand.u32 2147483647, %v2675_v39  ;;  %1633 = vrcp.f32 %v2896_v40  ;;  %v1632_v38 = vpop.eup %1631 }
 0x259   :  { %v504_v11 = vmul.f32 1.442695, %v3504_v52  ;;  %v3512_v12 = vsub.f32 %v3510_v20, %v3511_v9  ;;  %v1039_v23 = vadd.f32 %v1017_v30, %v975_v21  ;;  %725 = vst.msk [vmem:[#allocation3 + $0x10] sm:$0xff] %vm37_vm2, %v708_v4  ;;  %v1165_v33 = vmul.f32 %v2793_v22, %v1164_v13 }
 0x25a   :  { %vm2966_vm7 = vcmp.eq.f32.partialorder %v3507_v28, 8.507059e+37  ;;  %v1233_v43 = vmul.f32 %v2877_v56, %v2801_v47  ;;  %1635 = vrcp.f32 %v2914_v45  ;;  %v1415_v8 = vmul.f32 -1.0, %v1351_v31 }
 0x25b   :  { %v488_v59 = vmul.f32 1.442695, %v3512_v12  ;;  %v1180_v24 = vadd.f32 %v2730_v36, %v2862_v34  ;;  %v3515_v13 = vand.u32 2147483647, %v2712_v35  ;;  %1637 = vpow2.f32 %v496_v3  ;;  %v1311_v34 = vld [vmem:[#allocation4 + $0x48] sm:$0xff]  ;;  %v3054_v12 = vld [vmem:[#allocation5 + $0x78] sm:$0xff] }
 0x25c   :  { %v1212_v18 = vsel %vm2984_vm9, %v2815_v16, %v1208_v25  ;;  %v1327_v30 = vmul.f32 %v2715_v58, %v1039_v23  ;;  %vm1214_vm5 = vcmp.eq.f32.partialorder %v1213_v62, 8.507059e+37  ;;  %v1216_v4 = vor.u32 1.1754944e-38, %v1215_v44  ;;  %1447 = vst.msk [vmem:[%s3321_s4 + $0x8] sm:$0xff] %vm37_vm2, %v1415_v8 }
 0x25d   :  { %vm2993_vm13 = vcmp.eq.f32.partialorder %v3515_v13, 8.507059e+37  ;;  %1639 = vpow2.f32 %v504_v11  ;;  %v1114_v3 = vsel %vm2956_vm15, %v2604_v60, %v2671_v15  ;;  %v540_v55 = vmul.f32 %v1630_v32, %v524_v27 }
 0x25e   :  { %1641 = vpow2.f32 %v488_v59  ;;  %v1343_v16 = vsub.f32 %v1311_v34, %v1327_v30  ;;  %v544_v62 = vmul.f32 %v1632_v38, %v528_v42  ;;  %v1166_v60 = vadd.f32 %v2793_v22, %v1165_v33  ;;  %v695_v44 = vpop.xlane.xlu2 %694  ;;  %v703_v21 = vpop.xlane.xlu1 %702  ;;  %v3525_v38 = vld [vmem:[#allocation15_spill] sm:$0xff]  ;;  %v3526_v33 = vld [vmem:[#allocation16_spill] sm:$0xff] }
 0x25f   :  { %v1234_v15 = vsub.f32 1.0, %v1233_v43  ;;  %v3031_v37 = vmax.f32 %v2997_v61, 1.0  ;;  %v1217_v49 = vsel %vm1214_vm5, %v1216_v4, %v1212_v18  ;;  %v3033_v19 = vpop.eup %1633  ;;  %v988_v52 = vld [vmem:[#allocation3 + $0x30] sm:$0xff]  ;;  %v716_v11 = vadd.f32 %v695_v44, %v540_v55  ;;  %v525_v42 = vld [vmem:[#allocation3 + $0x58] sm:$0xff] }
 0x260   :  { %v1359_v5 = vmul.f32 %v1343_v16, %v1217_v49  ;;  %v720_v31 = vadd.f32 %v703_v21, %v544_v62  ;;  %v1184_v39 = vsel %vm3025_vm14, %v2730_v36, %v1180_v24  ;;  %v3038_v32 = vpop.eup %1635  ;;  %v3524_v28 = vand.u32 2147483648, %v2712_v35  ;;  %v984_v36 = vld [vmem:[#allocation3 + $0x10] sm:$0xff]  ;;  %v517_v30 = vld [vmem:[#allocation3 + $0x18] sm:$0xff] }
 0x261   :  { %v3052_v9 = vmul.f32 %v2859_v54, %v2790_v57  ;;  %1643 = vlog2.f32 %v988_v52  ;;  %v1128_v59 = vsel %vm3017_vm0, %v2721_v53, %v2962_v50  ;;  %v1638_v23 = vpop.eup %1637  ;;  %v3527_v43 = vsub.f32 %v3525_v38, %v3526_v33  ;;  %733 = vst.msk [vmem:[#allocation3 + $0x50] sm:$0xff] %vm37_vm2, %v716_v11  ;;  %v521_v53 = vld [vmem:[#allocation3 + $0x38] sm:$0xff]  ;;  %v769_v33 = vld [vmem:[#allocation4 + $0x70] sm:$0xff] }
 0x262   :  { %v1174_v20 = vor.u32 1.1754944e-38, %v3524_v28  ;;  %v1423_v35 = vmul.f32 -1.0, %v1359_v5  ;;  %v3066_v8 = vsel %vm2924_vm1, %v2657_v63, %v1114_v3  ;;  %1645 = vlog2.f32 %v984_v36  ;;  %737 = vst.msk [vmem:[#allocation3 + $0x70] sm:$0xff] %vm37_vm2, %v720_v31  ;;  %v972_v31 = vld [vmem:[#allocation2 + $0x30] sm:$0xff] }
 0x263   :  { %v512_v0 = vmul.f32 1.442695, %v3527_v43  ;;  %v1640_v27 = vpop.eup %1639  ;;  %1647 = vrcp.f32 %v3031_v37  ;;  %v3074_v50 = vsel %vm2966_vm7, %v2744_v41, %v1184_v39  ;;  %v1235_v24 = vmul.f32 %v2877_v56, %v1234_v15 }
 0x264   :  { %vm1237_vm11 = vweird.f32 %v2801_v47  ;;  %v1642_v63 = vpop.eup %1641  ;;  %v3079_v6 = vmax.f32 %v3054_v12, 1.0  ;;  %v1439_v13 = vmul.f32 0.0, %v1423_v35  ;;  %v1170_v18 = vsel %vm3044_vm6, %v2793_v22, %v1166_v60  ;;  %v994_v22 = vld [vmem:[#allocation3 + $0x60] sm:$0xff] }
 0x265   :  { %v3087_v41 = vsel %vm2942_vm8, %v2742_v29, %v1128_v59  ;;  %v1220_v1 = vsub.f32 1.0, %v3052_v9  ;;  %v1247_v4 = vmul.f32 %v3038_v32, %v2914_v45  ;;  %vm1238_vm3 = vweird.f32 %v2877_v56 }
 0x266   :  { %v1243_v34 = vand.u32 2147483648, %v2801_v47  ;;  %v1275_v3 = vmul.f32 %v3033_v19, %v2896_v40  ;;  %1649 = vpow2.f32 %v512_v0  ;;  %1455 = vst.msk [vmem:[%s3321_s4 + $0x48] sm:$0xff] %vm37_vm2, %v1439_v13  ;;  %v537_v29 = vmul.f32 %v1638_v23, %v521_v53  ;;  %v689_v55 = vpop.xlane.xlu2 %688  ;;  %v697_v25 = vpop.xlane.xlu1 %696  ;;  %vm3120_vm4 = vmor %vm1237_vm11, %vm1238_vm3 }
 0x267   :  { %v541_v17 = vmul.f32 %v1640_v27, %v525_v42  ;;  %v1644_v58 = vpop.eup %1643  ;;  %v3102_v16 = vsel %vm2993_vm13, %v1174_v20, %v1170_v18  ;;  %v533_v62 = vmul.f32 %v1642_v63, %v517_v30  ;;  %v3105_v60 = vadd.f32 %v2877_v56, %v1235_v24  ;;  %v681_v5 = vpop.xlane.xlu0 %680  ;;  %v968_v20 = vld [vmem:[#allocation2 + $0x10] sm:$0xff]  ;;  %v529_v63 = vld [vmem:[#allocation3 + $0x78] sm:$0xff] }
 0x268   :  { %v1241_v15 = vand.u32 2147483647, %v2801_v47  ;;  %v1646_v49 = vpop.eup %1645  ;;  %1651 = vrcp.f32 %v3079_v6  ;;  %v1011_v44 = vmul.f32 0.6931472, %v1644_v58  ;;  %v713_v21 = vadd.f32 %v689_v55, %v537_v29  ;;  %v1308_v27 = vld [vmem:[#allocation4 + $0x30] sm:$0xff] }
 0x269   :  { %v717_v52 = vadd.f32 %v697_v25, %v541_v17  ;;  %v3109_v11 = vpop.eup %1647  ;;  %v1248_v51 = vsub.f32 1.0, %v1247_v4  ;;  %1653 = vlog2.f32 %v994_v22  ;;  %v1003_v39 = vmul.f32 0.6931472, %v1646_v49  ;;  %v996_v42 = vld [vmem:[#allocation3 + $0x70] sm:$0xff]  ;;  %v766_v4 = vld [vmem:[#allocation4 + $0x58] sm:$0xff] }
 0x26a   :  { %v709_v2 = vadd.f32 %v681_v5, %v533_v62  ;;  %v1276_v28 = vsub.f32 1.0, %v1275_v3  ;;  %v1036_v36 = vadd.f32 %v1011_v44, %v972_v31  ;;  %730 = vst.msk [vmem:[#allocation3 + $0x38] sm:$0xff] %vm37_vm2, %v713_v21  ;;  %v3112_v59 = vor.u32 1.1754944e-38, %v1243_v34  ;;  %v992_v30 = vld [vmem:[#allocation3 + $0x50] sm:$0xff]  ;;  %v767_v34 = vld [vmem:[#allocation4 + $0x60] sm:$0xff] }
 0x26b   :  { %vm1279_vm12 = vweird.f32 %v2896_v40  ;;  %v1032_v23 = vadd.f32 %v1003_v39, %v968_v20  ;;  %vm3124_vm1 = vcmp.eq.f32.partialorder %v1241_v15, 8.507059e+37  ;;  %vm1251_vm8 = vweird.f32 %v2914_v45  ;;  %734 = vst.msk [vmem:[#allocation3 + $0x58] sm:$0xff] %vm37_vm2, %v717_v52  ;;  %v1304_v22 = vld [vmem:[#allocation4 + $0x10] sm:$0xff] }
 0x26c   :  { %726 = vst.msk [vmem:[#allocation3 + $0x18] sm:$0xff] %vm37_vm2, %v709_v2  ;;  %v1255_v43 = vand.u32 2147483647, %v2914_v45  ;;  %v1257_v0 = vand.u32 2147483648, %v2914_v45  ;;  %vm1224_vm10 = vweird.f32 %v2859_v54  ;;  %v1650_v35 = vpop.eup %1649  ;;  %v3134_v47 = vmul.f32 %v3109_v11, %v3031_v37  ;;  %v770_v45 = vld [vmem:[#allocation4 + $0x78] sm:$0xff] }
 0x26d   :  { %v1324_v53 = vmul.f32 %v2694_v10, %v1036_v36  ;;  %v1240_v24 = vsel %vm3120_vm4, %v2877_v56, %v3105_v60  ;;  %v1283_v13 = vand.u32 2147483647, %v2896_v40  ;;  %v1320_v18 = vmul.f32 %v2588_v26, %v1032_v23 }
 0x26e   :  { %v1249_v3 = vmul.f32 %v3038_v32, %v1248_v51  ;;  %vm1252_vm15 = vweird.f32 %v3038_v32  ;;  %vm1280_vm7 = vweird.f32 %v3033_v19  ;;  %vm1223_vm9 = vweird.f32 %v2790_v57  ;;  %v3148_v10 = vpop.eup %1651  ;;  %v810_v62 = vpop.xlane.xlu2 %809 }
 0x26f   :  { %v1340_v56 = vsub.f32 %v1308_v27, %v1324_v53  ;;  %v1277_v29 = vmul.f32 %v3033_v19, %v1276_v28  ;;  %v1285_v17 = vand.u32 2147483648, %v2896_v40  ;;  %v1221_v26 = vmul.f32 %v2859_v54, %v1220_v1  ;;  %v1654_v58 = vpop.eup %1653  ;;  %v812_v15 = vpop.xlane.xlu1 %811  ;;  %vm3174_vm5 = vmor %vm1279_vm12, %vm1280_vm7 }
 0x270   :  { %v1336_v55 = vsub.f32 %v1304_v22, %v1320_v18  ;;  %1655 = vlog2.f32 %v996_v42  ;;  %v545_v25 = vmul.f32 %v1650_v35, %v529_v63  ;;  %vm3155_vm13 = vcmp.eq.f32.partialorder %v1255_v43, 8.507059e+37  ;;  %v705_v5 = vpop.xlane.xlu0 %704  ;;  %v995_v35 = vld [vmem:[#allocation3 + $0x68] sm:$0xff]  ;;  %vm3189_vm0 = vmor %vm1251_vm8, %vm1252_vm15  ;;  %v765_v22 = vld [vmem:[#allocation4 + $0x50] sm:$0xff] }
 0x271   :  { %v1227_v49 = vand.u32 2147483647, %v2790_v57  ;;  %v1356_v44 = vmul.f32 %v1340_v56, %v3102_v16  ;;  %1657 = vlog2.f32 %v992_v30  ;;  %v830_v21 = vadd.f32 %v810_v62, %v766_v4  ;;  %v989_v51 = vld [vmem:[#allocation3 + $0x38] sm:$0xff]  ;;  %v978_v30 = vld [vmem:[#allocation2 + $0x60] sm:$0xff]  ;;  %vm3214_vm6 = vmor %vm1223_vm9, %vm1224_vm10 }
 0x272   :  { %v831_v9 = vadd.f32 %v812_v15, %v767_v34  ;;  %v3163_v1 = vmul.f32 %v3148_v10, %v3079_v6  ;;  %v1352_v52 = vmul.f32 %v1336_v55, %v3066_v8  ;;  %v721_v31 = vadd.f32 %v705_v5, %v545_v25  ;;  %v993_v23 = vld [vmem:[#allocation3 + $0x58] sm:$0xff]  ;;  %v976_v8 = vld [vmem:[#allocation2 + $0x50] sm:$0xff] }
 0x273   :  { %v1250_v39 = vadd.f32 %v3038_v32, %v1249_v3  ;;  %v1023_v2 = vmul.f32 0.6931472, %v1654_v58  ;;  %v1420_v28 = vmul.f32 -1.0, %v1356_v44  ;;  %1659 = vlog2.f32 %v989_v51  ;;  %v985_v20 = vld [vmem:[#allocation3 + $0x18] sm:$0xff]  ;;  %846 = vst.msk [vmem:[#allocation4 + $0x58] sm:$0xff] %vm37_vm2, %v830_v21 }
 0x274   :  { %v1278_v16 = vadd.f32 %v3033_v19, %v1277_v29  ;;  %v1416_v36 = vmul.f32 -1.0, %v1352_v52  ;;  %1661 = vlog2.f32 %v985_v20  ;;  %738 = vst.msk [vmem:[#allocation3 + $0x78] sm:$0xff] %vm37_vm2, %v721_v31  ;;  %v1222_v38 = vadd.f32 %v2859_v54, %v1221_v26 }
 0x275   :  { %v1229_v43 = vand.u32 2147483648, %v2790_v57  ;;  %v1436_v27 = vmul.f32 0.0, %v1420_v28  ;;  %1663 = vlog2.f32 %v993_v23  ;;  %v3183_v53 = vsel %vm3124_vm1, %v3112_v59, %v1240_v24  ;;  %847 = vst.msk [vmem:[#allocation4 + $0x60] sm:$0xff] %vm37_vm2, %v831_v9  ;;  %v969_v28 = vld [vmem:[#allocation2 + $0x18] sm:$0xff] }
 0x276   :  { %v1258_v42 = vor.u32 1.1754944e-38, %v1257_v0  ;;  %v1656_v63 = vpop.eup %1655  ;;  %v1262_v18 = vsub.f32 1.0, %v3134_v47  ;;  %v1432_v4 = vmul.f32 0.0, %v1416_v36  ;;  %v1254_v59 = vsel %vm3189_vm0, %v3038_v32, %v1250_v39  ;;  %v816_v56 = vpop.xlane.xlu2 %815 }
 0x277   :  { %vm3198_vm14 = vcmp.eq.f32.partialorder %v1283_v13, 8.507059e+37  ;;  %v1658_v34 = vpop.eup %1657  ;;  %v1290_v0 = vsub.f32 1.0, %v3163_v1  ;;  %1452 = vst.msk [vmem:[%s3321_s4 + $0x30] sm:$0xff] %vm37_vm2, %v1436_v27  ;;  %v1042_v47 = vadd.f32 %v1023_v2, %v978_v30  ;;  %v1282_v3 = vsel %vm3174_vm5, %v3033_v19, %v1278_v16  ;;  %v973_v1 = vld [vmem:[#allocation2 + $0x38] sm:$0xff]  ;;  %v980_v2 = vld [vmem:[#allocation2 + $0x70] sm:$0xff] }
 0x278   :  { %v1286_v32 = vor.u32 1.1754944e-38, %v1285_v17  ;;  %1665 = vlog2.f32 %v995_v35  ;;  %1448 = vst.msk [vmem:[%s3321_s4 + $0x10] sm:$0xff] %vm37_vm2, %v1432_v4  ;;  %v1226_v19 = vsel %vm3214_vm6, %v2859_v54, %v1222_v38  ;;  %vm3225_vm11 = vcmp.eq.f32.partialorder %v1227_v49, 8.507059e+37  ;;  %v818_v17 = vpop.xlane.xlu1 %817  ;;  %v808_v25 = vpop.xlane.xlu0 %807  ;;  %v1309_v4 = vld [vmem:[#allocation4 + $0x38] sm:$0xff] }
 0x279   :  { %v1230_v57 = vor.u32 1.1754944e-38, %v1229_v43  ;;  %v1660_v26 = vpop.eup %1659  ;;  %v1027_v58 = vmul.f32 0.6931472, %v1656_v63  ;;  %v1259_v55 = vsel %vm3155_vm13, %v1258_v42, %v1254_v59  ;;  %v833_v62 = vadd.f32 %v816_v56, %v769_v33 }
 0x27a   :  { %v834_v15 = vadd.f32 %v818_v17, %v770_v45  ;;  %v1662_v44 = vpop.eup %1661  ;;  %v1019_v21 = vmul.f32 0.6931472, %v1658_v34  ;;  %v1013_v5 = vmul.f32 0.6931472, %v1660_v26  ;;  %v3233_v54 = vsel %vm3198_vm14, %v1286_v32, %v1282_v3  ;;  %v768_v45 = vld [vmem:[#allocation4 + $0x68] sm:$0xff]  ;;  %v1305_v34 = vld [vmem:[#allocation4 + $0x18] sm:$0xff] }
 0x27b   :  { %v829_v49 = vadd.f32 %v808_v25, %v765_v22  ;;  %v1664_v9 = vpop.eup %1663  ;;  %v1005_v52 = vmul.f32 0.6931472, %v1662_v44  ;;  %v997_v51 = vld [vmem:[#allocation3 + $0x78] sm:$0xff]  ;;  %v1330_v31 = vmul.f32 %v2890_v46, %v1042_v47  ;;  %849 = vst.msk [vmem:[#allocation4 + $0x70] sm:$0xff] %vm37_vm2, %v833_v62  ;;  %v3239_v60 = vsel %vm3225_vm11, %v1230_v57, %v1226_v19 }
 0x27c   :  { %v1291_v39 = vmul.f32 %v3148_v10, %v1290_v0  ;;  %v1037_v20 = vadd.f32 %v1013_v5, %v973_v1  ;;  %v1021_v16 = vmul.f32 0.6931472, %v1664_v9  ;;  %1667 = vlog2.f32 %v997_v51  ;;  %v1314_v36 = vld [vmem:[#allocation4 + $0x60] sm:$0xff]  ;;  %v977_v46 = vld [vmem:[#allocation2 + $0x58] sm:$0xff]  ;;  %850 = vst.msk [vmem:[#allocation4 + $0x78] sm:$0xff] %vm37_vm2, %v834_v15 }
 0x27d   :  { %845 = vst.msk [vmem:[#allocation4 + $0x50] sm:$0xff] %vm37_vm2, %v829_v49  ;;  %v1263_v23 = vmul.f32 %v3109_v11, %v1262_v18  ;;  %v1033_v38 = vadd.f32 %v1005_v52, %v969_v28  ;;  %v1346_v43 = vsub.f32 %v1314_v36, %v1330_v31  ;;  %v1044_v35 = vadd.f32 %v1027_v58, %v980_v2  ;;  %v3544_v47 = vld [vmem:[#allocation20_spill] sm:$0xff]  ;;  %v3545_v58 = vld [vmem:[#allocation19_spill] sm:$0xff] }
 0x27e   :  { %vm1293_vm3 = vweird.f32 %v3079_v6  ;;  %vm1294_vm12 = vweird.f32 %v3148_v10  ;;  %v1666_v27 = vpop.eup %1665  ;;  %v1325_v40 = vmul.f32 %v2644_v7, %v1037_v20  ;;  %v1041_v42 = vadd.f32 %v1021_v16, %v977_v46  ;;  %v1313_v13 = vld [vmem:[#allocation4 + $0x58] sm:$0xff] }
 0x27f   :  { %v1040_v63 = vadd.f32 %v1019_v21, %v976_v8  ;;  %v1297_v30 = vand.u32 2147483647, %v3079_v6  ;;  %v1321_v18 = vmul.f32 %v2639_v48, %v1033_v38  ;;  %v1362_v59 = vmul.f32 %v1346_v43, %v1259_v55  ;;  %v981_v49 = vld [vmem:[#allocation2 + $0x78] sm:$0xff]  ;;  %vm3275_vm1 = vmor %vm1293_vm3, %vm1294_vm12 }
 0x280   :  { %v1292_v33 = vadd.f32 %v3148_v10, %v1291_v39  ;;  %v1299_v24 = vand.u32 2147483648, %v3079_v6  ;;  %v1341_v0 = vsub.f32 %v1309_v4, %v1325_v40  ;;  %v1329_v3 = vmul.f32 %v3544_v47, %v1041_v42  ;;  %v814_v19 = vpop.xlane.xlu0 %813 }
 0x281   :  { %v3254_v32 = vadd.f32 %v3109_v11, %v1263_v23  ;;  %vm1266_vm4 = vweird.f32 %v3109_v11  ;;  %v1025_v7 = vmul.f32 0.6931472, %v1666_v27  ;;  %v1337_v22 = vsub.f32 %v1305_v34, %v1321_v18 }
 0x282   :  { %v1426_v56 = vmul.f32 -1.0, %v1362_v59  ;;  %v1332_v48 = vmul.f32 %v2882_v14, %v1044_v35  ;;  %v1668_v29 = vpop.eup %1667  ;;  %v1357_v57 = vmul.f32 %v1341_v0, %v3074_v50  ;;  %v1345_v17 = vsub.f32 %v1313_v13, %v1329_v3  ;;  %v1316_v26 = vld [vmem:[#allocation4 + $0x70] sm:$0xff]  ;;  %v979_v50 = vld [vmem:[#allocation2 + $0x68] sm:$0xff] }
 0x283   :  { %v1328_v55 = vmul.f32 %v3545_v58, %v1040_v63  ;;  %v832_v62 = vadd.f32 %v814_v19, %v768_v45  ;;  %v1353_v25 = vmul.f32 %v1337_v22, %v3087_v41  ;;  %v1029_v15 = vmul.f32 0.6931472, %v1668_v29  ;;  %v1317_v38 = vld [vmem:[#allocation4 + $0x78] sm:$0xff] }
 0x284   :  { %v1442_v44 = vmul.f32 0.0, %v1426_v56  ;;  %v1348_v21 = vsub.f32 %v1316_v26, %v1332_v48  ;;  %v1312_v5 = vld [vmem:[#allocation4 + $0x50] sm:$0xff]  ;;  %v1421_v9 = vmul.f32 -1.0, %v1357_v57  ;;  %v1361_v1 = vmul.f32 %v1345_v17, %v3183_v53 }
 0x285   :  { %v1344_v14 = vsub.f32 %v1312_v5, %v1328_v55  ;;  %v1269_v52 = vand.u32 2147483647, %v3031_v37  ;;  %848 = vst.msk [vmem:[#allocation4 + $0x68] sm:$0xff] %vm37_vm2, %v832_v62  ;;  %v1417_v51 = vmul.f32 -1.0, %v1353_v25  ;;  %v1045_v31 = vadd.f32 %v1029_v15, %v981_v49 }
 0x286   :  { %1458 = vst.msk [vmem:[%s3321_s4 + $0x60] sm:$0xff] %vm37_vm2, %v1442_v44  ;;  %v1364_v41 = vmul.f32 %v1348_v21, %v3233_v54  ;;  %v1271_v39 = vand.u32 2147483648, %v3031_v37  ;;  %v1437_v2 = vmul.f32 0.0, %v1421_v9  ;;  %v1425_v28 = vmul.f32 -1.0, %v1361_v1 }
 0x287   :  { %v1360_v53 = vmul.f32 %v1344_v14, %v3239_v60  ;;  %v1043_v16 = vadd.f32 %v1025_v7, %v979_v50  ;;  %v1433_v36 = vmul.f32 0.0, %v1417_v51  ;;  %v1296_v54 = vsel %vm3275_vm1, %v3148_v10, %v1292_v33 }
 0x288   :  { %v1428_v23 = vmul.f32 -1.0, %v1364_v41  ;;  %v1333_v8 = vmul.f32 %v3054_v12, %v1045_v31  ;;  %1453 = vst.msk [vmem:[%s3321_s4 + $0x38] sm:$0xff] %vm37_vm2, %v1437_v2  ;;  %v1441_v60 = vmul.f32 0.0, %v1425_v28  ;;  %v1300_v46 = vor.u32 1.1754944e-38, %v1299_v24 }
 0x289   :  { %v1424_v6 = vmul.f32 -1.0, %v1360_v53  ;;  %vm1265_vm8 = vweird.f32 %v3031_v37  ;;  %1449 = vst.msk [vmem:[%s3321_s4 + $0x18] sm:$0xff] %vm37_vm2, %v1433_v36  ;;  %vm1298_vm10 = vcmp.eq.f32.partialorder %v1297_v30, 8.507059e+37  ;;  %v1331_v27 = vmul.f32 %v2997_v61, %v1043_v16 }
 0x28a   :  { %v1444_v43 = vmul.f32 0.0, %v1428_v23  ;;  %v1349_v10 = vsub.f32 %v1317_v38, %v1333_v8  ;;  %vm1267_vm15 = vmor %vm1265_vm8, %vm1266_vm4  ;;  %1457 = vst.msk [vmem:[%s3321_s4 + $0x58] sm:$0xff] %vm37_vm2, %v1441_v60  ;;  %v1301_v35 = vsel %vm1298_vm10, %v1300_v46, %v1296_v54  ;;  %v1272_v42 = vor.u32 1.1754944e-38, %v1271_v39 }
 0x28b   :  { %v1440_v12 = vmul.f32 0.0, %v1424_v6  ;;  %v1268_v37 = vsel %vm1267_vm15, %v3109_v11, %v3254_v32  ;;  %vm1270_vm7 = vcmp.eq.f32.partialorder %v1269_v52, 8.507059e+37 }
 0x28c   :  { %1460 = vst.msk [vmem:[%s3321_s4 + $0x70] sm:$0xff] %vm37_vm2, %v1444_v43  ;;  %v1365_v40 = vmul.f32 %v1349_v10, %v1301_v35  ;;  %v1315_v63 = vld [vmem:[#allocation4 + $0x68] sm:$0xff]  ;;  %v1273_v18 = vsel %vm1270_vm7, %v1272_v42, %v1268_v37 }
 0x28d   :  { %1456 = vst.msk [vmem:[%s3321_s4 + $0x50] sm:$0xff] %vm37_vm2, %v1440_v12  ;;  %v1347_v30 = vsub.f32 %v1315_v63, %v1331_v27 }
 0x28e   :  { %v1429_v4 = vmul.f32 -1.0, %v1365_v40 }
 0x28f   :  { %v1363_v11 = vmul.f32 %v1347_v30, %v1273_v18 }
 0x290   :  { %v1445_v59 = vmul.f32 0.0, %v1429_v4 }
 0x291   :  { %v1427_v61 = vmul.f32 -1.0, %v1363_v11 }
 0x292   :  { %1461 = vst.msk [vmem:[%s3321_s4 + $0x78] sm:$0xff] %vm37_vm2, %v1445_v59 }
 0x293   :  { %v1443_v33 = vmul.f32 0.0, %v1427_v61 }
 0x295   :  { %1459 = vst.msk [vmem:[%s3321_s4 + $0x68] sm:$0xff] %vm37_vm2, %v1443_v33 }
 0x296   :  { %1466 = vsyncpa [#allocation7], 1 }

</bundles_post_ra>
